<compile_context>
chip_gen: v6e
topology: v6e:2x2x1
jax: 0.10.0
libtpu: 0.0.40
codegen_flags: <defaults>
</compile_context>

<pallas_src>
import jax
import jax.numpy as jnp
from jax.experimental import pallas as pl
from jax.experimental.pallas import tpu as pltpu


D_IN = 28 * 28      # 784
H1_PAD = 384        # logical 300, padded to 3*128
H2_PAD = 128        # logical 100, padded to 128
Z_PAD = 128         # each latent head gets a full 128-lane group (z_dim <= 128)


def _round_up(a, m):
    return ((a + m - 1) // m) * m


def vae_kernel(x_ref, eps_ref,
               w1_ref, b1_ref, w2_ref, b2_ref, wh_ref, bh_ref,
               dw1_ref, db1_ref, dw2_ref, db2_ref, dw3_ref, db3_ref,
               xout_ref, lat_ref):
    tb = x_ref.shape[0]

    def mm(a, w_ref):
        return jnp.dot(a.astype(jnp.bfloat16), w_ref[...],
                       preferred_element_type=jnp.float32)

    # ---------------- Encoder ----------------
    # lr:  [TB, 784] @ [784, 384] + b ; ReLU
    h1 = jnp.maximum(mm(x_ref[...], w1_ref) + b1_ref[...], 0.0)
    # lr2: [TB, 384] @ [384, 128] + b ; ReLU
    h2 = jnp.maximum(mm(h1, w2_ref) + b2_ref[...], 0.0)
    # Fused lr_ave | lr_dev heads: [TB, 128] @ [128, 256] + b
    heads = mm(h2, wh_ref) + bh_ref[...]
    ave = heads[:, :Z_PAD]          # vreg-aligned 128-lane slice
    log_dev = heads[:, Z_PAD:]      # vreg-aligned 128-lane slice

    # Reparameterization: z = ave + exp(log_dev / 2) * eps  (padded lanes stay 0)
    z = ave + jnp.exp(log_dev * 0.5) * eps_ref[...]

    # Lane-aligned latent slab: [ z | ave | log_dev ], 128 lanes each.
    lat_ref[:, pl.ds(0, Z_PAD)] = z
    lat_ref[:, pl.ds(Z_PAD, 2 * Z_PAD)] = heads

    # ---------------- Decoder ----------------
    # Two independent row-halves: half-1's MXU matmuls overlap half-0's
    # 784-wide sigmoid on the EUP slot.
    n_sub = 2 if (tb >= 16 and tb % 16 == 0) else 1
    rows = tb // n_sub
    for s in range(n_sub):
        r0 = s * rows
        zs = z[r0:r0 + rows]
        # lr:  [rows, 128] @ [128, 128] + b ; ReLU
        d1 = jnp.maximum(mm(zs, dw1_ref) + db1_ref[...], 0.0)
        # lr2: [rows, 128] @ [128, 384] + b ; ReLU
        d2 = jnp.maximum(mm(d1, dw2_ref) + db2_ref[...], 0.0)
        # lr3: [rows, 384] @ [384, 784] + b ; sigmoid
        logits = mm(d2, dw3_ref) + db3_ref[...]
        xout_ref[pl.ds(r0, rows), :] = jax.nn.sigmoid(logits).astype(xout_ref.dtype)


def vae_forward(x, params, eps, *, xout_dtype=jnp.float32):
    """x: [B, 784] f32, eps: [B, z_dim] f32 (the torch.randn_like noise).

    Returns (x_out, z, ave, log_dev), matching VAE.forward.
    """
    B = x.shape[0]
    z_dim = eps.shape[-1]
    assert z_dim <= Z_PAD

    # Pad noise to the 128-lane latent group (padded lanes are exact zeros).
    eps_pad = jnp.pad(eps, ((0, 0), (0, Z_PAD - z_dim)))

    # Batch tile: >= 2 grid steps for B > 8 (lets "parallel" shard across the two
    # v7x TensorCores), cap at 512 to keep per-step overhead amortized on v5e.
    if B <= 8:
        TB = B
    else:
        TB = min(512, _round_up(pl.cdiv(B, 2), 8))
    grid = (pl.cdiv(B, TB),)

    def tiled(feat):
        return pl.BlockSpec((TB, feat), lambda i: (i, 0))

    def resident(arr):
        # Full-array block, same block every grid step -> loaded once, stays in VMEM.
        return pl.BlockSpec(arr.shape, lambda i: (0, 0))

    weight_keys = ["w1", "b1", "w2", "b2", "wh", "bh",
                   "dw1", "db1", "dw2", "db2", "dw3", "db3"]
    weight_args = [params[k] for k in weight_keys]

    in_specs = [tiled(D_IN), tiled(Z_PAD)] + [resident(w) for w in weight_args]
    out_specs = (tiled(D_IN), tiled(3 * Z_PAD))
    out_shape = (
        jax.ShapeDtypeStruct((B, D_IN), xout_dtype),          # x_out
        jax.ShapeDtypeStruct((B, 3 * Z_PAD), jnp.float32),    # [z | ave | log_dev]
    )

    x_out, lat = pl.pallas_call(
        vae_kernel,
        grid=grid,
        out_shape=out_shape,
        in_specs=in_specs,
        out_specs=out_specs,
        compiler_params=pltpu.CompilerParams(
            dimension_semantics=("parallel",),
            vmem_limit_bytes=32 * 1024 * 1024,
        ),
    )(x, eps_pad, *weight_args)

    z = lat[:, :z_dim]
    ave = lat[:, Z_PAD:Z_PAD + z_dim]
    log_dev = lat[:, 2 * Z_PAD:2 * Z_PAD + z_dim]
    return x_out, z, ave, log_dev


def init_params(key, z_dim):
    """Synthetic params matching the PyTorch VAE shapes, stored [in, out],
    zero-padded to lane-friendly widths; weights cast to bf16, biases f32."""
    ks = jax.random.split(key, 14)

    def lin(kw, kb, fan_in, fan_out):
        bound = 1.0 / jnp.sqrt(jnp.float32(fan_in))
        w = jax.random.uniform(kw, (fan_in, fan_out), jnp.float32, -bound, bound)
        b = jax.random.uniform(kb, (1, fan_out), jnp.float32, -bound, bound)
        return w, b

    def pad2(a, rows, cols):
        return jnp.pad(a, ((0, rows - a.shape[0]), (0, cols - a.shape[1])))

    # Encoder: 784 -> 300 -> 100 -> (z_dim, z_dim)
    w1, b1 = lin(ks[0], ks[1], D_IN, 300)
    w2, b2 = lin(ks[2], ks[3], 300, 100)
    wa, ba = lin(ks[4], ks[5], 100, z_dim)
    wd, bd = lin(ks[6], ks[7], 100, z_dim)
    # Decoder: z_dim -> 100 -> 300 -> 784
    dw1, db1 = lin(ks[8], ks[9], z_dim, 100)
    dw2, db2 = lin(ks[10], ks[11], 100, 300)
    dw3, db3 = lin(ks[12], ks[13], 300, D_IN)

    # Fused head, padded so ave occupies lanes [0,128) and log_dev lanes [128,256).
    wh = jnp.zeros((H2_PAD, 2 * Z_PAD), jnp.float32)
    wh = wh.at[:100, :z_dim].set(wa).at[:100, Z_PAD:Z_PAD + z_dim].set(wd)
    bh = jnp.zeros((1, 2 * Z_PAD), jnp.float32)
    bh = bh.at[:, :z_dim].set(ba).at[:, Z_PAD:Z_PAD + z_dim].set(bd)

    return dict(
        # Encoder (padded 784 -> 384 -> 128, heads fused & 128-lane aligned)
        w1=pad2(w1, D_IN, H1_PAD).astype(jnp.bfloat16),
        b1=pad2(b1, 1, H1_PAD),
        w2=pad2(w2, H1_PAD, H2_PAD).astype(jnp.bfloat16),
        b2=pad2(b2, 1, H2_PAD),
        wh=wh.astype(jnp.bfloat16),
        bh=bh,
        # Decoder (padded 128 -> 128 -> 384 -> 784)
        dw1=pad2(dw1, Z_PAD, H2_PAD).astype(jnp.bfloat16),
        db1=pad2(db1, 1, H2_PAD),
        dw2=pad2(dw2, H2_PAD, H1_PAD).astype(jnp.bfloat16),
        db2=pad2(db2, 1, H1_PAD),
        dw3=pad2(dw3, H1_PAD, D_IN).astype(jnp.bfloat16),
        db3=db3,
    )


def reference_forward(x, params, eps, z_dim):
    """Pure-JAX reference using the same padded bf16 weights / f32 accumulation."""
    def dot(a, w):
        return jnp.dot(a.astype(jnp.bfloat16), w, preferred_element_type=jnp.float32)

    eps_pad = jnp.pad(eps, ((0, 0), (0, Z_PAD - z_dim)))
    h1 = jnp.maximum(dot(x, params["w1"]) + params["b1"], 0.0)
    h2 = jnp.maximum(dot(h1, params["w2"]) + params["b2"], 0.0)
    heads = dot(h2, params["wh"]) + params["bh"]
    ave_p, dev_p = heads[:, :Z_PAD], heads[:, Z_PAD:]
    z_p = ave_p + jnp.exp(dev_p * 0.5) * eps_pad
    d1 = jnp.maximum(dot(z_p, params["dw1"]) + params["db1"], 0.0)
    d2 = jnp.maximum(dot(d1, params["dw2"]) + params["db2"], 0.0)
    x_out = jax.nn.sigmoid(dot(d2, params["dw3"]) + params["db3"])
    return x_out, z_p[:, :z_dim], ave_p[:, :z_dim], dev_p[:, :z_dim]


def _check(B, z_dim, params, key):
    k_x, k_eps = jax.random.split(key)
    x = jax.random.uniform(k_x, (B, D_IN), jnp.float32)       # MNIST-like in [0, 1)
    eps = jax.random.normal(k_eps, (B, z_dim), jnp.float32)   # torch.randn_like noise

    x_out, z, ave, log_dev = vae_forward(x, params, eps)
    jax.block_until_ready((x_out, z, ave, log_dev))

    assert x_out.shape == (B, D_IN)
    assert z.shape == (B, z_dim) and ave.shape == (B, z_dim) and log_dev.shape == (B, z_dim)
    assert bool(jnp.all(jnp.isfinite(x_out))) and bool(jnp.all(jnp.isfinite(z)))

    rx, rz, rave, rld = reference_forward(x, params, eps, z_dim)
    assert bool(jnp.allclose(x_out, rx, atol=2e-2, rtol=2e-2))
    assert bool(jnp.allclose(z, rz, atol=2e-2, rtol=2e-2))
    assert bool(jnp.allclose(ave, rave, atol=2e-2, rtol=2e-2))
    assert bool(jnp.allclose(log_dev, rld, atol=2e-2, rtol=2e-2))


if __name__ == "__main__":
    key = jax.random.PRNGKey(0)
    k_param, k_small, k_big = jax.random.split(key, 3)

    z_dim = 16
    params = init_params(k_param, z_dim)

    # Small-batch latency case (grid=(1,), no decoder sub-tiling).
    _check(B=8, z_dim=z_dim, params=params, key=k_small)
    # Larger batch: exercises grid>1 ("parallel" megacore path) + decoder sub-tiling.
    _check(B=64, z_dim=z_dim, params=params, key=k_big)

    # TODO(synk): torch.randn_like noise generation stays host-side (could move
    # in-kernel with pltpu.prng_seed + pltpu.stateful_normal for tiny batches).
    print("KERNEL_OK")
</pallas_src>

<mosaic_0001>
module attributes {stable_mosaic.version = 11 : i64} {
  func.func @vae_kernel(%arg0: i32, %arg1: memref<8x784xf32, #tpu.memory_space<vmem>>, %arg2: memref<8x128xf32, #tpu.memory_space<vmem>>, %arg3: memref<784x384xbf16, #tpu.memory_space<vmem>>, %arg4: memref<1x384xf32, #tpu.memory_space<vmem>>, %arg5: memref<384x128xbf16, #tpu.memory_space<vmem>>, %arg6: memref<1x128xf32, #tpu.memory_space<vmem>>, %arg7: memref<128x256xbf16, #tpu.memory_space<vmem>>, %arg8: memref<1x256xf32, #tpu.memory_space<vmem>>, %arg9: memref<128x128xbf16, #tpu.memory_space<vmem>>, %arg10: memref<1x128xf32, #tpu.memory_space<vmem>>, %arg11: memref<128x384xbf16, #tpu.memory_space<vmem>>, %arg12: memref<1x384xf32, #tpu.memory_space<vmem>>, %arg13: memref<384x784xbf16, #tpu.memory_space<vmem>>, %arg14: memref<1x784xf32, #tpu.memory_space<vmem>>, %arg15: memref<8x784xf32, #tpu.memory_space<vmem>>, %arg16: memref<8x384xf32, #tpu.memory_space<vmem>>) attributes {dimension_semantics = [#tpu.dimension_semantics<parallel>], iteration_bounds = array<i64: 1>, scalar_prefetch = 0 : i64, scratch_operands = 0 : i64, tpu.core_type = #tpu.core_type<tc>, window_params = [{transform_indices = @transform_0, window_bounds = array<i64: 8, 784>}, {transform_indices = @transform_1, window_bounds = array<i64: 8, 128>}, {pipeline_mode = #tpu.pipeline_mode<synchronous>, transform_indices = @transform_2, window_bounds = array<i64: 784, 384>}, {pipeline_mode = #tpu.pipeline_mode<synchronous>, transform_indices = @transform_3, window_bounds = array<i64: 1, 384>}, {pipeline_mode = #tpu.pipeline_mode<synchronous>, transform_indices = @transform_4, window_bounds = array<i64: 384, 128>}, {pipeline_mode = #tpu.pipeline_mode<synchronous>, transform_indices = @transform_5, window_bounds = array<i64: 1, 128>}, {pipeline_mode = #tpu.pipeline_mode<synchronous>, transform_indices = @transform_6, window_bounds = array<i64: 128, 256>}, {pipeline_mode = #tpu.pipeline_mode<synchronous>, transform_indices = @transform_7, window_bounds = array<i64: 1, 256>}, {pipeline_mode = #tpu.pipeline_mode<synchronous>, transform_indices = @transform_8, window_bounds = array<i64: 128, 128>}, {pipeline_mode = #tpu.pipeline_mode<synchronous>, transform_indices = @transform_9, window_bounds = array<i64: 1, 128>}, {pipeline_mode = #tpu.pipeline_mode<synchronous>, transform_indices = @transform_10, window_bounds = array<i64: 128, 384>}, {pipeline_mode = #tpu.pipeline_mode<synchronous>, transform_indices = @transform_11, window_bounds = array<i64: 1, 384>}, {pipeline_mode = #tpu.pipeline_mode<synchronous>, transform_indices = @transform_12, window_bounds = array<i64: 384, 784>}, {pipeline_mode = #tpu.pipeline_mode<synchronous>, transform_indices = @transform_13, window_bounds = array<i64: 1, 784>}, {transform_indices = @transform_14, window_bounds = array<i64: 8, 784>}, {transform_indices = @transform_15, window_bounds = array<i64: 8, 384>}]} {
    %c0 = arith.constant 0 : index
    %c0_0 = arith.constant 0 : index
    %0 = vector.load %arg1[%c0, %c0_0] : memref<8x784xf32, #tpu.memory_space<vmem>>, vector<8x784xf32>
    %1 = arith.truncf %0 : vector<8x784xf32> to vector<8x784xbf16>
    %c0_1 = arith.constant 0 : index
    %c0_2 = arith.constant 0 : index
    %2 = vector.load %arg3[%c0_1, %c0_2] : memref<784x384xbf16, #tpu.memory_space<vmem>>, vector<784x384xbf16>
    %cst = arith.constant dense<0.000000e+00> : vector<8x384xf32>
    %3 = tpu.matmul %1, %2, %cst {dimension_numbers = #tpu.dot_dimension_numbers<[1], [0], [0], [1], [0, 0, 1, 1], [], []>} : vector<8x784xbf16>, vector<784x384xbf16>, vector<8x384xf32> -> vector<8x384xf32>
    %c0_3 = arith.constant 0 : index
    %c0_4 = arith.constant 0 : index
    %4 = vector.load %arg4[%c0_3, %c0_4] : memref<1x384xf32, #tpu.memory_space<vmem>>, vector<1x384xf32>
    %5 = vector.broadcast %4 : vector<1x384xf32> to vector<8x384xf32>
    %6 = arith.addf %3, %5 : vector<8x384xf32>
    %cst_5 = arith.constant 0.000000e+00 : f32
    %7 = vector.broadcast %cst_5 : f32 to vector<8x384xf32>
    %8 = arith.maximumf %6, %7 : vector<8x384xf32>
    %9 = arith.truncf %8 : vector<8x384xf32> to vector<8x384xbf16>
    %c0_6 = arith.constant 0 : index
    %c0_7 = arith.constant 0 : index
    %10 = vector.load %arg5[%c0_6, %c0_7] : memref<384x128xbf16, #tpu.memory_space<vmem>>, vector<384x128xbf16>
    %cst_8 = arith.constant dense<0.000000e+00> : vector<8x128xf32>
    %11 = tpu.matmul %9, %10, %cst_8 {dimension_numbers = #tpu.dot_dimension_numbers<[1], [0], [0], [1], [0, 0, 1, 1], [], []>} : vector<8x384xbf16>, vector<384x128xbf16>, vector<8x128xf32> -> vector<8x128xf32>
    %c0_9 = arith.constant 0 : index
    %c0_10 = arith.constant 0 : index
    %12 = vector.load %arg6[%c0_9, %c0_10] : memref<1x128xf32, #tpu.memory_space<vmem>>, vector<1x128xf32>
    %13 = vector.broadcast %12 : vector<1x128xf32> to vector<8x128xf32>
    %14 = arith.addf %11, %13 : vector<8x128xf32>
    %cst_11 = arith.constant 0.000000e+00 : f32
    %15 = vector.broadcast %cst_11 : f32 to vector<8x128xf32>
    %16 = arith.maximumf %14, %15 : vector<8x128xf32>
    %17 = arith.truncf %16 : vector<8x128xf32> to vector<8x128xbf16>
    %c0_12 = arith.constant 0 : index
    %c0_13 = arith.constant 0 : index
    %18 = vector.load %arg7[%c0_12, %c0_13] : memref<128x256xbf16, #tpu.memory_space<vmem>>, vector<128x256xbf16>
    %cst_14 = arith.constant dense<0.000000e+00> : vector<8x256xf32>
    %19 = tpu.matmul %17, %18, %cst_14 {dimension_numbers = #tpu.dot_dimension_numbers<[1], [0], [0], [1], [0, 0, 1, 1], [], []>} : vector<8x128xbf16>, vector<128x256xbf16>, vector<8x256xf32> -> vector<8x256xf32>
    %c0_15 = arith.constant 0 : index
    %c0_16 = arith.constant 0 : index
    %20 = vector.load %arg8[%c0_15, %c0_16] : memref<1x256xf32, #tpu.memory_space<vmem>>, vector<1x256xf32>
    %21 = vector.broadcast %20 : vector<1x256xf32> to vector<8x256xf32>
    %22 = arith.addf %19, %21 : vector<8x256xf32>
    %23 = vector.extract_strided_slice %22 {offsets = [0, 0], sizes = [8, 128], strides = [1, 1]} : vector<8x256xf32> to vector<8x128xf32>
    %24 = vector.extract_strided_slice %22 {offsets = [0, 128], sizes = [8, 128], strides = [1, 1]} : vector<8x256xf32> to vector<8x128xf32>
    %cst_17 = arith.constant 5.000000e-01 : f32
    %25 = vector.broadcast %cst_17 : f32 to vector<8x128xf32>
    %26 = arith.mulf %24, %25 : vector<8x128xf32>
    %27 = math.exp %26 : vector<8x128xf32>
    %c0_18 = arith.constant 0 : index
    %c0_19 = arith.constant 0 : index
    %28 = vector.load %arg2[%c0_18, %c0_19] : memref<8x128xf32, #tpu.memory_space<vmem>>, vector<8x128xf32>
    %29 = arith.mulf %27, %28 : vector<8x128xf32>
    %30 = arith.addf %23, %29 : vector<8x128xf32>
    %c0_20 = arith.constant 0 : index
    %c0_21 = arith.constant 0 : index
    %31 = vector.load %arg16[%c0_20, %c0_21] : memref<8x384xf32, #tpu.memory_space<vmem>>, vector<8x128xf32>
    tpu.vector_store %arg16[%c0_20, %c0_21], %30 {strides = array<i32>} : memref<8x384xf32, #tpu.memory_space<vmem>>, vector<8x128xf32>,
    %c0_22 = arith.constant 0 : index
    %c128 = arith.constant 128 : index
    %32 = vector.load %arg16[%c0_22, %c128] : memref<8x384xf32, #tpu.memory_space<vmem>>, vector<8x256xf32>
    tpu.vector_store %arg16[%c0_22, %c128], %22 {strides = array<i32>} : memref<8x384xf32, #tpu.memory_space<vmem>>, vector<8x256xf32>,
    %33 = arith.truncf %30 : vector<8x128xf32> to vector<8x128xbf16>
    %c0_23 = arith.constant 0 : index
    %c0_24 = arith.constant 0 : index
    %34 = vector.load %arg9[%c0_23, %c0_24] : memref<128x128xbf16, #tpu.memory_space<vmem>>, vector<128x128xbf16>
    %cst_25 = arith.constant dense<0.000000e+00> : vector<8x128xf32>
    %35 = tpu.matmul %33, %34, %cst_25 {dimension_numbers = #tpu.dot_dimension_numbers<[1], [0], [0], [1], [0, 0, 1, 1], [], []>} : vector<8x128xbf16>, vector<128x128xbf16>, vector<8x128xf32> -> vector<8x128xf32>
    %c0_26 = arith.constant 0 : index
    %c0_27 = arith.constant 0 : index
    %36 = vector.load %arg10[%c0_26, %c0_27] : memref<1x128xf32, #tpu.memory_space<vmem>>, vector<1x128xf32>
    %37 = vector.broadcast %36 : vector<1x128xf32> to vector<8x128xf32>
    %38 = arith.addf %35, %37 : vector<8x128xf32>
    %cst_28 = arith.constant 0.000000e+00 : f32
    %39 = vector.broadcast %cst_28 : f32 to vector<8x128xf32>
    %40 = arith.maximumf %38, %39 : vector<8x128xf32>
    %41 = arith.truncf %40 : vector<8x128xf32> to vector<8x128xbf16>
    %c0_29 = arith.constant 0 : index
    %c0_30 = arith.constant 0 : index
    %42 = vector.load %arg11[%c0_29, %c0_30] : memref<128x384xbf16, #tpu.memory_space<vmem>>, vector<128x384xbf16>
    %cst_31 = arith.constant dense<0.000000e+00> : vector<8x384xf32>
    %43 = tpu.matmul %41, %42, %cst_31 {dimension_numbers = #tpu.dot_dimension_numbers<[1], [0], [0], [1], [0, 0, 1, 1], [], []>} : vector<8x128xbf16>, vector<128x384xbf16>, vector<8x384xf32> -> vector<8x384xf32>
    %c0_32 = arith.constant 0 : index
    %c0_33 = arith.constant 0 : index
    %44 = vector.load %arg12[%c0_32, %c0_33] : memref<1x384xf32, #tpu.memory_space<vmem>>, vector<1x384xf32>
    %45 = vector.broadcast %44 : vector<1x384xf32> to vector<8x384xf32>
    %46 = arith.addf %43, %45 : vector<8x384xf32>
    %cst_34 = arith.constant 0.000000e+00 : f32
    %47 = vector.broadcast %cst_34 : f32 to vector<8x384xf32>
    %48 = arith.maximumf %46, %47 : vector<8x384xf32>
    %49 = arith.truncf %48 : vector<8x384xf32> to vector<8x384xbf16>
    %c0_35 = arith.constant 0 : index
    %c0_36 = arith.constant 0 : index
    %50 = vector.load %arg13[%c0_35, %c0_36] : memref<384x784xbf16, #tpu.memory_space<vmem>>, vector<384x784xbf16>
    %cst_37 = arith.constant dense<0.000000e+00> : vector<8x784xf32>
    %51 = tpu.matmul %49, %50, %cst_37 {dimension_numbers = #tpu.dot_dimension_numbers<[1], [0], [0], [1], [0, 0, 1, 1], [], []>} : vector<8x384xbf16>, vector<384x784xbf16>, vector<8x784xf32> -> vector<8x784xf32>
    %c0_38 = arith.constant 0 : index
    %c0_39 = arith.constant 0 : index
    %52 = vector.load %arg14[%c0_38, %c0_39] : memref<1x784xf32, #tpu.memory_space<vmem>>, vector<1x784xf32>
    %53 = vector.broadcast %52 : vector<1x784xf32> to vector<8x784xf32>
    %54 = arith.addf %51, %53 : vector<8x784xf32>
    %55 = arith.negf %54 : vector<8x784xf32>
    %56 = math.exp %55 : vector<8x784xf32>
    %cst_40 = arith.constant 1.000000e+00 : f32
    %57 = vector.broadcast %cst_40 : f32 to vector<8x784xf32>
    %58 = arith.addf %57, %56 : vector<8x784xf32>
    %59 = arith.divf %57, %58 : vector<8x784xf32>
    %c0_41 = arith.constant 0 : index
    %c0_42 = arith.constant 0 : index
    %60 = vector.load %arg15[%c0_41, %c0_42] : memref<8x784xf32, #tpu.memory_space<vmem>>, vector<8x784xf32>
    tpu.vector_store %arg15[%c0_41, %c0_42], %59 {strides = array<i32>} : memref<8x784xf32, #tpu.memory_space<vmem>>, vector<8x784xf32>,
    return
  }
  func.func @transform_0(%arg0: i32) -> (i32, i32) {
    %c0_i32 = arith.constant 0 : i32
    %c0_i32_0 = arith.constant 0 : i32
    return %arg0, %c0_i32 : i32, i32
  }
  func.func @transform_1(%arg0: i32) -> (i32, i32) {
    %c0_i32 = arith.constant 0 : i32
    %c0_i32_0 = arith.constant 0 : i32
    return %arg0, %c0_i32 : i32, i32
  }
  func.func @transform_2(%arg0: i32) -> (i32, i32) {
    %c0_i32 = arith.constant 0 : i32
    %c0_i32_0 = arith.constant 0 : i32
    %c0_i32_1 = arith.constant 0 : i32
    return %c0_i32, %c0_i32_0 : i32, i32
  }
  func.func @transform_3(%arg0: i32) -> (i32, i32) {
    %c0_i32 = arith.constant 0 : i32
    %c0_i32_0 = arith.constant 0 : i32
    %c0_i32_1 = arith.constant 0 : i32
    return %c0_i32, %c0_i32_0 : i32, i32
  }
  func.func @transform_4(%arg0: i32) -> (i32, i32) {
    %c0_i32 = arith.constant 0 : i32
    %c0_i32_0 = arith.constant 0 : i32
    %c0_i32_1 = arith.constant 0 : i32
    return %c0_i32, %c0_i32_0 : i32, i32
  }
  func.func @transform_5(%arg0: i32) -> (i32, i32) {
    %c0_i32 = arith.constant 0 : i32
    %c0_i32_0 = arith.constant 0 : i32
    %c0_i32_1 = arith.constant 0 : i32
    return %c0_i32, %c0_i32_0 : i32, i32
  }
  func.func @transform_6(%arg0: i32) -> (i32, i32) {
    %c0_i32 = arith.constant 0 : i32
    %c0_i32_0 = arith.constant 0 : i32
    %c0_i32_1 = arith.constant 0 : i32
    return %c0_i32, %c0_i32_0 : i32, i32
  }
  func.func @transform_7(%arg0: i32) -> (i32, i32) {
    %c0_i32 = arith.constant 0 : i32
    %c0_i32_0 = arith.constant 0 : i32
    %c0_i32_1 = arith.constant 0 : i32
    return %c0_i32, %c0_i32_0 : i32, i32
  }
  func.func @transform_8(%arg0: i32) -> (i32, i32) {
    %c0_i32 = arith.constant 0 : i32
    %c0_i32_0 = arith.constant 0 : i32
    %c0_i32_1 = arith.constant 0 : i32
    return %c0_i32, %c0_i32_0 : i32, i32
  }
  func.func @transform_9(%arg0: i32) -> (i32, i32) {
    %c0_i32 = arith.constant 0 : i32
    %c0_i32_0 = arith.constant 0 : i32
    %c0_i32_1 = arith.constant 0 : i32
    return %c0_i32, %c0_i32_0 : i32, i32
  }
  func.func @transform_10(%arg0: i32) -> (i32, i32) {
    %c0_i32 = arith.constant 0 : i32
    %c0_i32_0 = arith.constant 0 : i32
    %c0_i32_1 = arith.constant 0 : i32
    return %c0_i32, %c0_i32_0 : i32, i32
  }
  func.func @transform_11(%arg0: i32) -> (i32, i32) {
    %c0_i32 = arith.constant 0 : i32
    %c0_i32_0 = arith.constant 0 : i32
    %c0_i32_1 = arith.constant 0 : i32
    return %c0_i32, %c0_i32_0 : i32, i32
  }
  func.func @transform_12(%arg0: i32) -> (i32, i32) {
    %c0_i32 = arith.constant 0 : i32
    %c0_i32_0 = arith.constant 0 : i32
    %c0_i32_1 = arith.constant 0 : i32
    return %c0_i32, %c0_i32_0 : i32, i32
  }
  func.func @transform_13(%arg0: i32) -> (i32, i32) {
    %c0_i32 = arith.constant 0 : i32
    %c0_i32_0 = arith.constant 0 : i32
    %c0_i32_1 = arith.constant 0 : i32
    return %c0_i32, %c0_i32_0 : i32, i32
  }
  func.func @transform_14(%arg0: i32) -> (i32, i32) {
    %c0_i32 = arith.constant 0 : i32
    %c0_i32_0 = arith.constant 0 : i32
    return %arg0, %c0_i32 : i32, i32
  }
  func.func @transform_15(%arg0: i32) -> (i32, i32) {
    %c0_i32 = arith.constant 0 : i32
    %c0_i32_0 = arith.constant 0 : i32
    return %arg0, %c0_i32 : i32, i32
  }
}

</mosaic_0001>

<bundles_post_ra>
// kernel: tpu_custom_call.1
= control target key start
LH: loop header
LB: loop body
LE: loop exit
PB: predicated region body
PF: predicated region fallthrough
CT: control target
= control target key end

     0   :  { %21 = vsyncpa [#allocation3], 0  ;;  %vm4947_vm0 = vmmov 0   ;;  %vm1063_vm1 = vcmask 130048   ;;  %s6364_s0 = inlined_call_operand.vmem [shape: f32[8,784], index: 0, kind: input, shape index: {}]   ;;  %s6365_s1 = inlined_call_operand.vmem [shape: f32[8,128], index: 1, kind: input, shape index: {}]   ;;  %s6366_s2 = inlined_call_operand.vmem [shape: bf16[784,384], index: 2, kind: input, shape index: {}]   ;;  %s6367_s3 = inlined_call_operand.vmem [shape: f32[1,384], index: 3, kind: input, shape index: {}]   ;;  %s6368_s4 = inlined_call_operand.vmem [shape: bf16[384,128], index: 4, kind: input, shape index: {}]   ;;  %s6369_s5 = inlined_call_operand.vmem [shape: f32[1,128], index: 5, kind: input, shape index: {}]   ;;  %s6370_s6 = inlined_call_operand.vmem [shape: bf16[128,256], index: 6, kind: input, shape index: {}]   ;;  %s6371_s7 = inlined_call_operand.vmem [shape: f32[1,256], index: 7, kind: input, shape index: {}]   ;;  %s6372_s8 = inlined_call_operand.vmem [shape: bf16[128,128], index: 8, kind: input, shape index: {}]   ;;  %s6373_s9 = inlined_call_operand.vmem [shape: f32[1,128], index: 9, kind: input, shape index: {}]   ;;  %s6374_s10 = inlined_call_operand.vmem [shape: bf16[128,384], index: 10, kind: input, shape index: {}]   ;;  %s6375_s11 = inlined_call_operand.vmem [shape: f32[1,384], index: 11, kind: input, shape index: {}]   ;;  %s6376_s12 = inlined_call_operand.vmem [shape: bf16[384,784], index: 12, kind: input, shape index: {}]   ;;  %s6377_s13 = inlined_call_operand.vmem [shape: f32[1,784], index: 13, kind: input, shape index: {}]   ;;  %s6378_s14 = inlined_call_operand.hbm [shape: f32[8,784], index: 14, kind: output, shape index: {0}]   ;;  %s6379_s15 = inlined_call_operand.hbm [shape: f32[8,384], index: 15, kind: output, shape index: {1}]  }
   0x1   :  { %v4347_v0 = vld [vmem:[%s6366_s2 + $0xac] ss:$12 sps:$4 sm:$0xff]   ;;  %v4349_v1 = vld [vmem:[%s6366_s2 + $0xa8] ss:$12 sps:$4 sm:$0xff]   ;;  %v4355_v5 = vld [vmem:[%s6366_s2 + $0x90] ss:$12 sps:$4 sm:$0xff]  }
   0x2   :  { %1067 = vmatprep.subr.bf16.mxu0 %v4347_v0  ;;  %v4350_v2 = vld [vmem:[%s6366_s2 + $0x22c] ss:$12 sps:$4 sm:$0xff]   ;;  %v4352_v3 = vld [vmem:[%s6366_s2 + $0x228] ss:$12 sps:$4 sm:$0xff]   ;;  %v4358_v7 = vld [vmem:[%s6366_s2 + $0x210] ss:$12 sps:$4 sm:$0xff]  }
   0x3   :  { %1068 = vmatpush1.bf16.msra.mxu0 %v4349_v1  ;;  %v4353_v4 = vld [vmem:[%s6366_s2 + $0x94] ss:$12 sps:$4 sm:$0xff]   ;;  %1108 = vmatprep.subr.bf16.mxu1 %v4350_v2  ;;  %v4359_v8 = vld [vmem:[%s6366_s2 + $0x7c] ss:$12 sps:$4 sm:$0xff]   ;;  %v4361_v9 = vld [vmem:[%s6366_s2 + $0x78] ss:$12 sps:$4 sm:$0xff]  }
   0x4   :  { %v4356_v6 = vld [vmem:[%s6366_s2 + $0x214] ss:$12 sps:$4 sm:$0xff]   ;;  %1109 = vmatpush1.bf16.msra.mxu1 %v4352_v3  ;;  %1069 = vmatprep.subr.bf16.mxu0 %v4353_v4  ;;  %v4362_v10 = vld [vmem:[%s6366_s2 + $0x1fc] ss:$12 sps:$4 sm:$0xff]   ;;  %v4365_v11 = vld [vmem:[%s6366_s2 + $0x64] ss:$12 sps:$4 sm:$0xff]  }
   0x5   :  { %1110 = vmatprep.subr.bf16.mxu1 %v4356_v6  ;;  %v4364_v12 = vld [vmem:[%s6366_s2 + $0x1f8] ss:$12 sps:$4 sm:$0xff]   ;;  %v4367_v14 = vld [vmem:[%s6366_s2 + $0x60] ss:$12 sps:$4 sm:$0xff]   ;;  %v4373_v18 = vld [vmem:[%s6366_s2 + $0x48] ss:$12 sps:$4 sm:$0xff]  }
   0x6   :  { %v4368_v13 = vld [vmem:[%s6366_s2 + $0x1e4] ss:$12 sps:$4 sm:$0xff]   ;;  %v4371_v15 = vld [vmem:[%s6366_s2 + $0x4c] ss:$12 sps:$4 sm:$0xff]   ;;  %v4377_v19 = vld [vmem:[%s6366_s2 + $0x34] ss:$12 sps:$4 sm:$0xff]  }
   0x7   :  { %1070 = vmatpush1.bf16.msra.mxu0 %v4355_v5  ;;  %v4370_v16 = vld [vmem:[%s6366_s2 + $0x1e0] ss:$12 sps:$4 sm:$0xff]   ;;  %v4376_v20 = vld [vmem:[%s6366_s2 + $0x1c8] ss:$12 sps:$4 sm:$0xff]   ;;  %v4379_v22 = vld [vmem:[%s6366_s2 + $0x30] ss:$12 sps:$4 sm:$0xff]  }
   0x8   :  { %1071 = vmatprep.subr.bf16.mxu0 %v4359_v8  ;;  %1111 = vmatpush1.bf16.msra.mxu1 %v4358_v7  ;;  %v4374_v17 = vld [vmem:[%s6366_s2 + $0x1cc] ss:$12 sps:$4 sm:$0xff]   ;;  %v4380_v21 = vld [vmem:[%s6366_s2 + $0x1b4] ss:$12 sps:$4 sm:$0xff]   ;;  %v4383_v23 = vld [vmem:[%s6366_s2 + $0x1c] ss:$12 sps:$4 sm:$0xff]  }
   0x9   :  { %1112 = vmatprep.subr.bf16.mxu1 %v4362_v10  ;;  %v4382_v24 = vld [vmem:[%s6366_s2 + $0x1b0] ss:$12 sps:$4 sm:$0xff]   ;;  %v4385_v26 = vld [vmem:[%s6366_s2 + $0x18] ss:$12 sps:$4 sm:$0xff]   ;;  %v4391_v30 = vld [vmem:[%s6366_s2] ss:$12 sps:$4 sm:$0xff]  }
   0xa   :  { %v4386_v25 = vld [vmem:[%s6366_s2 + $0x19c] ss:$12 sps:$4 sm:$0xff]   ;;  %v4389_v27 = vld [vmem:[%s6366_s2 + $0x4] ss:$12 sps:$4 sm:$0xff]   ;;  %v4395_v31 = vld [vmem:[%s6366_s2 + $0x16c] ss:$12 sps:$4 sm:$0xff]  }
   0xb   :  { %1072 = vmatpush1.bf16.msra.mxu0 %v4361_v9  ;;  %v4388_v28 = vld [vmem:[%s6366_s2 + $0x198] ss:$12 sps:$4 sm:$0xff]   ;;  %v4394_v32 = vld [vmem:[%s6366_s2 + $0x180] ss:$12 sps:$4 sm:$0xff]   ;;  %v4397_v34 = vld [vmem:[%s6366_s2 + $0x168] ss:$12 sps:$4 sm:$0xff]  }
   0xc   :  { %1073 = vmatprep.subr.bf16.mxu0 %v4365_v11  ;;  %1113 = vmatpush1.bf16.msra.mxu1 %v4364_v12  ;;  %v4392_v29 = vld [vmem:[%s6366_s2 + $0x184] ss:$12 sps:$4 sm:$0xff]   ;;  %v4398_v33 = vld [vmem:[%s6366_s2 + $0x2ec] ss:$12 sps:$4 sm:$0xff]   ;;  %v4401_v35 = vld [vmem:[%s6366_s2 + $0x154] ss:$12 sps:$4 sm:$0xff]  }
   0xd   :  { %1114 = vmatprep.subr.bf16.mxu1 %v4368_v13  ;;  %v4400_v36 = vld [vmem:[%s6366_s2 + $0x2e8] ss:$12 sps:$4 sm:$0xff]   ;;  %v4403_v38 = vld [vmem:[%s6366_s2 + $0x150] ss:$12 sps:$4 sm:$0xff]   ;;  %v4409_v42 = vld [vmem:[%s6366_s2 + $0x138] ss:$12 sps:$4 sm:$0xff]  }
   0xe   :  { %v4404_v37 = vld [vmem:[%s6366_s2 + $0x2d4] ss:$12 sps:$4 sm:$0xff]   ;;  %v4407_v39 = vld [vmem:[%s6366_s2 + $0x13c] ss:$12 sps:$4 sm:$0xff]   ;;  %v4413_v43 = vld [vmem:[%s6366_s2 + $0x124] ss:$12 sps:$4 sm:$0xff]  }
   0xf   :  { %1074 = vmatpush1.bf16.msra.mxu0 %v4367_v14  ;;  %v4406_v40 = vld [vmem:[%s6366_s2 + $0x2d0] ss:$12 sps:$4 sm:$0xff]   ;;  %v4412_v44 = vld [vmem:[%s6366_s2 + $0x2b8] ss:$12 sps:$4 sm:$0xff]   ;;  %v53_v46 = vld [vmem:[%s6364_s0 + $0x8] sm:$0xff] }
  0x10   :  { %1075 = vmatprep.subr.bf16.mxu0 %v4371_v15  ;;  %1115 = vmatpush1.bf16.msra.mxu1 %v4370_v16  ;;  %v4410_v41 = vld [vmem:[%s6366_s2 + $0x2bc] ss:$12 sps:$4 sm:$0xff]   ;;  %v4416_v45 = vld [vmem:[%s6366_s2 + $0x2a4] ss:$12 sps:$4 sm:$0xff]   ;;  %v4415_v47 = vld [vmem:[%s6366_s2 + $0x120] ss:$12 sps:$4 sm:$0xff]   ;;  %v60_v48 = vpack.c.bf16 %v53_v46, %v53_v46 }
  0x11   :  { %1116 = vmatprep.subr.bf16.mxu1 %v4374_v17  ;;  %v4419_v49 = vld [vmem:[%s6366_s2 + $0x10c] ss:$12 sps:$4 sm:$0xff]   ;;  %v4421_v54 = vld [vmem:[%s6366_s2 + $0x108] ss:$12 sps:$4 sm:$0xff]   ;;  %v4427_v58 = vld [vmem:[%s6366_s2 + $0xf0] ss:$12 sps:$4 sm:$0xff]  }
  0x12   :  { %v55_v50 = vld [vmem:[%s6364_s0 + $0x18] sm:$0xff]  ;;  %v4418_v51 = vld [vmem:[%s6366_s2 + $0x2a0] ss:$12 sps:$4 sm:$0xff]   ;;  %1099 = vmatprep.mubr.bf16.mxu0 %v60_v48  ;;  %v4424_v56 = vld [vmem:[%s6366_s2 + $0x288] ss:$12 sps:$4 sm:$0xff]  }
  0x13   :  { %1076 = vmatpush1.bf16.msra.mxu0 %v4373_v18  ;;  %v5183_v52 = vpack.c.bf16 %v55_v50, %v55_v50  ;;  %v4422_v53 = vld [vmem:[%s6366_s2 + $0x28c] ss:$12 sps:$4 sm:$0xff]   ;;  %v4425_v55 = vld [vmem:[%s6366_s2 + $0xf4] ss:$12 sps:$4 sm:$0xff]   ;;  %v4431_v59 = vld [vmem:[%s6366_s2 + $0xdc] ss:$12 sps:$4 sm:$0xff]  }
  0x14   :  { %1077 = vmatprep.subr.bf16.mxu0 %v4377_v19  ;;  %1117 = vmatpush1.bf16.msra.mxu1 %v4376_v20  ;;  %v4428_v57 = vld [vmem:[%s6366_s2 + $0x274] ss:$12 sps:$4 sm:$0xff]   ;;  %v4430_v60 = vld [vmem:[%s6366_s2 + $0x270] ss:$12 sps:$4 sm:$0xff]   ;;  %v4433_v62 = vld [vmem:[%s6366_s2 + $0xd8] ss:$12 sps:$4 sm:$0xff]  }
  0x15   :  { %1118 = vmatprep.subr.bf16.mxu1 %v4380_v21  ;;  %1140 = vmatprep.mubr.bf16.mxu1 %v5183_v52  ;;  %v4434_v61 = vld [vmem:[%s6366_s2 + $0x25c] ss:$12 sps:$4 sm:$0xff]   ;;  %v4436_v63 = vld [vmem:[%s6366_s2 + $0x258] ss:$12 sps:$4 sm:$0xff]   ;;  %v4439_v1 = vld [vmem:[%s6366_s2 + $0xc0] ss:$12 sps:$4 sm:$0xff]  }
  0x16   :  { %v4437_v0 = vld [vmem:[%s6366_s2 + $0xc4] ss:$12 sps:$4 sm:$0xff]   ;;  %v4442_v3 = vld [vmem:[%s6366_s2 + $0x240] ss:$12 sps:$4 sm:$0xff]   ;;  %v4443_v9 = vld [vmem:[%s6366_s2 + $0x3a8] ss:$12 sps:$4 sm:$0xff]  }
  0x17   :  { %1078 = vmatpush1.bf16.msra.mxu0 %v4379_v22  ;;  %v4440_v2 = vld [vmem:[%s6366_s2 + $0x244] ss:$12 sps:$4 sm:$0xff]   ;;  %v4445_v5 = vld [vmem:[%s6366_s2 + $0x3ac] ss:$12 sps:$4 sm:$0xff]   ;;  %v4448_v11 = vld [vmem:[%s6366_s2 + $0x394] ss:$12 sps:$4 sm:$0xff]  }
  0x18   :  { %1079 = vmatprep.subr.bf16.mxu0 %v4383_v23  ;;  %1119 = vmatpush1.bf16.msra.mxu1 %v4382_v24  ;;  %v52_v4 = vld [vmem:[%s6364_s0] sm:$0xff]  ;;  %v54_v6 = vld [vmem:[%s6364_s0 + $0x10] sm:$0xff]  ;;  %v4453_v15 = vld [vmem:[%s6366_s2 + $0x37c] ss:$12 sps:$4 sm:$0xff]  }
  0x19   :  { %1120 = vmatprep.subr.bf16.mxu1 %v4386_v25  ;;  %v5240_v7 = vpack.c.bf16 %v52_v4, %v52_v4  ;;  %v4449_v8 = vld [vmem:[%s6366_s2 + $0x170] ss:$12 sps:$4 sm:$0xff]   ;;  %v5248_v10 = vpack.c.bf16 %v54_v6, %v54_v6  ;;  %v4454_v13 = vld [vmem:[%s6366_s2 + $0x158] ss:$12 sps:$4 sm:$0xff]   ;;  %v4459_v17 = vld [vmem:[%s6366_s2 + $0x140] ss:$12 sps:$4 sm:$0xff]  }
  0x1a   :  { %v4450_v12 = vld [vmem:[%s6366_s2 + $0xb0] ss:$12 sps:$4 sm:$0xff]   ;;  %v4455_v16 = vld [vmem:[%s6366_s2 + $0x98] ss:$12 sps:$4 sm:$0xff]   ;;  %v4460_v20 = vld [vmem:[%s6366_s2 + $0x80] ss:$12 sps:$4 sm:$0xff]  }
  0x1b   :  { %1080 = vmatpush1.bf16.msra.mxu0 %v4385_v26  ;;  %v4446_v14 = vld [vmem:[%s6366_s2 + $0x390] ss:$12 sps:$4 sm:$0xff]   ;;  %v4451_v18 = vld [vmem:[%s6366_s2 + $0x378] ss:$12 sps:$4 sm:$0xff]   ;;  %v4464_v21 = vld [vmem:[%s6366_s2 + $0x128] ss:$12 sps:$4 sm:$0xff]  }
  0x1c   :  { %1081 = vmatprep.subr.bf16.mxu0 %v4389_v27  ;;  %1121 = vmatpush1.bf16.msra.mxu1 %v4388_v28  ;;  %v4458_v19 = vld [vmem:[%s6366_s2 + $0x364] ss:$12 sps:$4 sm:$0xff]   ;;  %v4456_v22 = vld [vmem:[%s6366_s2 + $0x360] ss:$12 sps:$4 sm:$0xff]   ;;  %v4465_v24 = vld [vmem:[%s6366_s2 + $0x68] ss:$12 sps:$4 sm:$0xff]  }
  0x1d   :  { %1122 = vmatprep.subr.bf16.mxu1 %v4392_v29  ;;  %v4463_v23 = vld [vmem:[%s6366_s2 + $0x34c] ss:$12 sps:$4 sm:$0xff]   ;;  %v4469_v25 = vld [vmem:[%s6366_s2 + $0x110] ss:$12 sps:$4 sm:$0xff]   ;;  %v4461_v26 = vld [vmem:[%s6366_s2 + $0x348] ss:$12 sps:$4 sm:$0xff]  }
  0x1e   :  { %v4468_v27 = vld [vmem:[%s6366_s2 + $0x334] ss:$12 sps:$4 sm:$0xff]   ;;  %v4470_v28 = vld [vmem:[%s6366_s2 + $0x50] ss:$12 sps:$4 sm:$0xff]   ;;  %v4474_v29 = vld [vmem:[%s6366_s2 + $0xf8] ss:$12 sps:$4 sm:$0xff]  }
  0x1f   :  { %1082 = vmatpush1.bf16.msra.mxu0 %v4391_v30  ;;  %v4466_v30 = vld [vmem:[%s6366_s2 + $0x330] ss:$12 sps:$4 sm:$0xff]   ;;  %v4495_v50 = vld [vmem:[%s6366_s2 + $0x218] ss:$12 sps:$4 sm:$0xff]   ;;  %v4520_v6 = vld [vmem:[%s6366_s2 + $0x1a0] ss:$12 sps:$4 sm:$0xff]  }
  0x20   :  { %1083 = vmatprep.subr.bf16.mxu0 %v4395_v31  ;;  %1123 = vmatpush1.bf16.msra.mxu1 %v4394_v32  ;;  %v4473_v31 = vld [vmem:[%s6366_s2 + $0x31c] ss:$12 sps:$4 sm:$0xff]   ;;  %v4475_v32 = vld [vmem:[%s6366_s2 + $0x38] ss:$12 sps:$4 sm:$0xff]  }
  0x21   :  { %1124 = vmatprep.subr.bf16.mxu1 %v4398_v33  ;;  %v4479_v33 = vld [vmem:[%s6366_s2 + $0xe0] ss:$12 sps:$4 sm:$0xff]   ;;  %v4490_v46 = vld [vmem:[%s6366_s2 + $0x230] ss:$12 sps:$4 sm:$0xff]   ;;  %v4511_v4 = vld [vmem:[%s6366_s2 + $0x3d8] ss:$12 sps:$4 sm:$0xff]  }
  0x23   :  { %1084 = vmatpush2.bf16.msra.mxu0 %v4397_v34  ;;  %v4471_v34 = vld [vmem:[%s6366_s2 + $0x318] ss:$12 sps:$4 sm:$0xff]  }
  0x24   :  { %1085 = vmatprep.subr.bf16.mxu0 %v4401_v35  ;;  %1125 = vmatpush2.bf16.msra.mxu1 %v4400_v36  ;;  %v4478_v35 = vld [vmem:[%s6366_s2 + $0x304] ss:$12 sps:$4 sm:$0xff]   ;;  %v4480_v36 = vld [vmem:[%s6366_s2 + $0x20] ss:$12 sps:$4 sm:$0xff]  }
  0x25   :  { %1126 = vmatprep.subr.bf16.mxu1 %v4404_v37  ;;  %v4484_v37 = vld [vmem:[%s6366_s2 + $0xc8] ss:$12 sps:$4 sm:$0xff]  }
  0x27   :  { %1086 = vmatpush2.bf16.msra.mxu0 %v4403_v38  ;;  %v4476_v38 = vld [vmem:[%s6366_s2 + $0x300] ss:$12 sps:$4 sm:$0xff]  }
  0x28   :  { %1087 = vmatprep.subr.bf16.mxu0 %v4407_v39  ;;  %1127 = vmatpush2.bf16.msra.mxu1 %v4406_v40  ;;  %v4483_v39 = vld [vmem:[%s6366_s2 + $0x46c] ss:$12 sps:$4 sm:$0xff]   ;;  %v4485_v40 = vld [vmem:[%s6366_s2 + $0x8] ss:$12 sps:$4 sm:$0xff]  }
  0x29   :  { %1128 = vmatprep.subr.bf16.mxu1 %v4410_v41  ;;  %v4489_v41 = vld [vmem:[%s6366_s2 + $0x2f0] ss:$12 sps:$4 sm:$0xff]  }
  0x2b   :  { %1088 = vmatpush2.bf16.msra.mxu0 %v4409_v42  ;;  %v57_v42 = vld [vmem:[%s6364_s0 + $0x28] sm:$0xff] }
  0x2c   :  { %1089 = vmatprep.subr.bf16.mxu0 %v4413_v43  ;;  %1129 = vmatpush2.bf16.msra.mxu1 %v4412_v44  ;;  %v4481_v43 = vld [vmem:[%s6366_s2 + $0x468] ss:$12 sps:$4 sm:$0xff]   ;;  %v5351_v44 = vpack.c.bf16 %v57_v42, %v57_v42  ;;  %v4550_v42 = vld [vmem:[%s6368_s4 + $0x20] sm:$0xff]  }
  0x2d   :  { %1130 = vmatprep.subr.bf16.mxu1 %v4416_v45  ;;  %v4488_v45 = vld [vmem:[%s6366_s2 + $0x454] ss:$12 sps:$4 sm:$0xff]  }
  0x2f   :  { %1090 = vmatpush2.bf16.msra.mxu0 %v4415_v47  ;;  %v4494_v47 = vld [vmem:[%s6366_s2 + $0x2d8] ss:$12 sps:$4 sm:$0xff]  }
  0x30   :  { %1091 = vmatprep.subr.bf16.mxu0 %v4419_v49  ;;  %1131 = vmatpush2.bf16.msra.mxu1 %v4418_v51  ;;  %v4493_v49 = vld [vmem:[%s6366_s2 + $0x43c] ss:$12 sps:$4 sm:$0xff]   ;;  %v4499_v51 = vld [vmem:[%s6366_s2 + $0x2c0] ss:$12 sps:$4 sm:$0xff]  }
  0x31   :  { %1132 = vmatprep.subr.bf16.mxu1 %v4422_v53  ;;  %v4491_v53 = vld [vmem:[%s6366_s2 + $0x438] ss:$12 sps:$4 sm:$0xff]  }
  0x33   :  { %1092 = vmatpush2.bf16.msra.mxu0 %v4421_v54  ;;  %v4498_v54 = vld [vmem:[%s6366_s2 + $0x424] ss:$12 sps:$4 sm:$0xff]  }
  0x34   :  { %1093 = vmatprep.subr.bf16.mxu0 %v4425_v55  ;;  %1133 = vmatpush2.bf16.msra.mxu1 %v4424_v56  ;;  %v4504_v55 = vld [vmem:[%s6366_s2 + $0x2a8] ss:$12 sps:$4 sm:$0xff]   ;;  %v4496_v56 = vld [vmem:[%s6366_s2 + $0x420] ss:$12 sps:$4 sm:$0xff]  }
  0x35   :  { %1134 = vmatprep.subr.bf16.mxu1 %v4428_v57  ;;  %v4503_v57 = vld [vmem:[%s6366_s2 + $0x40c] ss:$12 sps:$4 sm:$0xff]  }
  0x37   :  { %1094 = vmatpush2.bf16.msra.mxu0 %v4427_v58  ;;  %v4505_v58 = vld [vmem:[%s6366_s2 + $0x1e8] ss:$12 sps:$4 sm:$0xff]  }
  0x38   :  { %1095 = vmatprep.subr.bf16.mxu0 %v4431_v59  ;;  %1135 = vmatpush2.bf16.msra.mxu1 %v4430_v60  ;;  %v4509_v59 = vld [vmem:[%s6366_s2 + $0x290] ss:$12 sps:$4 sm:$0xff]   ;;  %v4501_v60 = vld [vmem:[%s6366_s2 + $0x408] ss:$12 sps:$4 sm:$0xff]  }
  0x39   :  { %1136 = vmatprep.subr.bf16.mxu1 %v4434_v61  ;;  %v4508_v61 = vld [vmem:[%s6366_s2 + $0x3f4] ss:$12 sps:$4 sm:$0xff]  }
  0x3b   :  { %1096 = vmatpush2.bf16.msra.mxu0 %v4433_v62  ;;  %v4506_v62 = vld [vmem:[%s6366_s2 + $0x3f0] ss:$12 sps:$4 sm:$0xff]  }
  0x3c   :  { %1097 = vmatprep.subr.bf16.mxu0 %v4437_v0  ;;  %1137 = vmatpush2.bf16.msra.mxu1 %v4436_v63  ;;  %v4510_v63 = vld [vmem:[%s6366_s2 + $0x1d0] ss:$12 sps:$4 sm:$0xff]   ;;  %v4514_v0 = vld [vmem:[%s6366_s2 + $0x278] ss:$12 sps:$4 sm:$0xff]  }
  0x3d   :  { %1138 = vmatprep.subr.bf16.mxu1 %v4440_v2  ;;  %v4515_v2 = vld [vmem:[%s6366_s2 + $0x1b8] ss:$12 sps:$4 sm:$0xff]  }
  0x3f   :  { %1098 = vmatpush2.bf16.msra.mxu0 %v4439_v1  ;;  %v4513_v1 = vld [vmem:[%s6366_s2 + $0x3dc] ss:$12 sps:$4 sm:$0xff]  }
  0x40   :  { %1149 = vmatprep.subr.bf16.mxu0 %v4445_v5  ;;  %1139 = vmatpush2.bf16.msra.mxu1 %v4442_v3  ;;  %v4519_v3 = vld [vmem:[%s6366_s2 + $0x260] ss:$12 sps:$4 sm:$0xff]   ;;  %v4518_v5 = vld [vmem:[%s6366_s2 + $0x3c4] ss:$12 sps:$4 sm:$0xff]  }
  0x41   :  { %4108 = vmatprep.subr.bf16.mxu1 %v4449_v8  ;;  %v4516_v8 = vld [vmem:[%s6366_s2 + $0x3c0] ss:$12 sps:$4 sm:$0xff]  }
  0x42   :  { %1100 = vmatmul.mubr.bf16.vlgmr.msra.gmra.mxu0 %v5240_v7 }
  0x43   :  { %1150 = vmatpush1.bf16.msra.mxu0 %v4443_v9  ;;  %1141 = vmatmul.mubr.bf16.vlgmr.msra.gmra.mxu1 %v5248_v10  ;;  %v56_v9 = vld [vmem:[%s6364_s0 + $0x20] sm:$0xff] }
  0x44   :  { %1151 = vmatprep.subr.bf16.mxu0 %v4448_v11  ;;  %4109 = vmatpush3.bf16.msra.mxu1 %v4450_v12  ;;  %v4523_v11 = vld [vmem:[%s6366_s2 + $0x484] ss:$12 sps:$4 sm:$0xff]   ;;  %v4525_v12 = vld [vmem:[%s6366_s2 + $0x188] ss:$12 sps:$4 sm:$0xff]  }
  0x45   :  { %1263 = vmatprep.mubr.bf16.mxu1 %v60_v48  ;;  %4110 = vmatprep.subr.bf16.mxu1 %v4454_v13  ;;  %v4486_v48 = vld [vmem:[%s6366_s2 + $0x450] ss:$12 sps:$4 sm:$0xff]   ;;  %v4521_v13 = vld [vmem:[%s6366_s2 + $0x480] ss:$12 sps:$4 sm:$0xff]  }
  0x46   :  { %1181 = vmatprep.mubr.bf16.mxu0 %v5351_v44 }
  0x47   :  { %1152 = vmatpush1.bf16.msra.mxu0 %v4446_v14  ;;  %v5452_v14 = vpack.c.bf16 %v56_v9, %v56_v9 }
  0x48   :  { %1153 = vmatprep.subr.bf16.mxu0 %v4453_v15  ;;  %4111 = vmatpush3.bf16.msra.mxu1 %v4455_v16  ;;  %v4526_v15 = vld [vmem:[%s6366_s2 + $0x470] ss:$12 sps:$4 sm:$0xff]   ;;  %v4542_v16 = vld [vmem:[%s6366_s2 + $0x488] ss:$12 sps:$4 sm:$0xff]  }
  0x49   :  { %4112 = vmatprep.subr.bf16.mxu1 %v4459_v17  ;;  %v58_v17 = vld [vmem:[%s6364_s0 + $0x30] sm:$0xff] }
  0x4b   :  { %1154 = vmatpush1.bf16.msra.mxu0 %v4451_v18  ;;  %v4945_v18 = vmov 0.0  }
  0x4c   :  { %1155 = vmatprep.subr.bf16.mxu0 %v4458_v19  ;;  %4113 = vmatpush3.bf16.msra.mxu1 %v4460_v20  ;;  %v4946_v19 = vmov 0   ;;  %v4527_v20 = vld [vmem:[%s6366_s2 + $0x3b0] ss:$12 sps:$4 sm:$0xff]  }
  0x4d   :  { %4114 = vmatprep.subr.bf16.mxu1 %v4464_v21  ;;  %v65_v21 = vpack.c.bf16 %v58_v17, %v58_v17 }
  0x4f   :  { %1156 = vmatpush1.bf16.msra.mxu0 %v4456_v22  ;;  %v4528_v22 = vld [vmem:[%s6366_s2 + $0x458] ss:$12 sps:$4 sm:$0xff]  }
  0x50   :  { %1157 = vmatprep.subr.bf16.mxu0 %v4463_v23  ;;  %4115 = vmatpush3.bf16.msra.mxu1 %v4465_v24  ;;  %v4544_v23 = vld [vmem:[%s6368_s4 + $0x38] sm:$0xff]  }
  0x51   :  { %4116 = vmatprep.subr.bf16.mxu1 %v4469_v25  ;;  %v4529_v24 = vld [vmem:[%s6366_s2 + $0x398] ss:$12 sps:$4 sm:$0xff]   ;;  %v4530_v25 = vld [vmem:[%s6366_s2 + $0x440] ss:$12 sps:$4 sm:$0xff]  }
  0x53   :  { %1158 = vmatpush1.bf16.msra.mxu0 %v4461_v26  ;;  %v4545_v26 = vld [vmem:[%s6368_s4 + $0x70] sm:$0xff]  }
  0x54   :  { %1159 = vmatprep.subr.bf16.mxu0 %v4468_v27  ;;  %4117 = vmatpush3.bf16.msra.mxu1 %v4470_v28  ;;  %v4546_v27 = vld [vmem:[%s6368_s4 + $0x30] sm:$0xff]   ;;  %v4531_v28 = vld [vmem:[%s6366_s2 + $0x380] ss:$12 sps:$4 sm:$0xff]  }
  0x55   :  { %4118 = vmatprep.subr.bf16.mxu1 %v4474_v29  ;;  %v4547_v29 = vld [vmem:[%s6368_s4 + $0x68] sm:$0xff]  }
  0x57   :  { %1160 = vmatpush1.bf16.msra.mxu0 %v4466_v30  ;;  %v4532_v30 = vld [vmem:[%s6366_s2 + $0x428] ss:$12 sps:$4 sm:$0xff]  }
  0x58   :  { %1161 = vmatprep.subr.bf16.mxu0 %v4473_v31  ;;  %4119 = vmatpush3.bf16.msra.mxu1 %v4475_v32  ;;  %v4548_v31 = vld [vmem:[%s6368_s4 + $0x28] sm:$0xff]  }
  0x59   :  { %4120 = vmatprep.subr.bf16.mxu1 %v4479_v33  ;;  %v4533_v32 = vld [vmem:[%s6366_s2 + $0x368] ss:$12 sps:$4 sm:$0xff]   ;;  %v4534_v33 = vld [vmem:[%s6366_s2 + $0x410] ss:$12 sps:$4 sm:$0xff]  }
  0x5b   :  { %1162 = vmatpush1.bf16.msra.mxu0 %v4471_v34  ;;  %v4535_v34 = vld [vmem:[%s6366_s2 + $0x350] ss:$12 sps:$4 sm:$0xff]  }
  0x5c   :  { %1163 = vmatprep.subr.bf16.mxu0 %v4478_v35  ;;  %4121 = vmatpush3.bf16.msra.mxu1 %v4480_v36  ;;  %v4536_v35 = vld [vmem:[%s6366_s2 + $0x3f8] ss:$12 sps:$4 sm:$0xff]  }
  0x5d   :  { %4122 = vmatprep.subr.bf16.mxu1 %v4484_v37  ;;  %v4537_v36 = vld [vmem:[%s6366_s2 + $0x338] ss:$12 sps:$4 sm:$0xff]   ;;  %v4538_v37 = vld [vmem:[%s6366_s2 + $0x3e0] ss:$12 sps:$4 sm:$0xff]  }
  0x5f   :  { %1164 = vmatpush1.bf16.msra.mxu0 %v4476_v38  ;;  %v4539_v38 = vld [vmem:[%s6366_s2 + $0x320] ss:$12 sps:$4 sm:$0xff]  }
  0x60   :  { %1165 = vmatprep.subr.bf16.mxu0 %v4483_v39  ;;  %4123 = vmatpush3.bf16.msra.mxu1 %v4485_v40  ;;  %v4540_v39 = vld [vmem:[%s6366_s2 + $0x3c8] ss:$12 sps:$4 sm:$0xff]  }
  0x61   :  { %4130 = vmatprep.subr.bf16.mxu1 %v4489_v41  ;;  %v4541_v40 = vld [vmem:[%s6366_s2 + $0x308] ss:$12 sps:$4 sm:$0xff]   ;;  %v4549_v41 = vld [vmem:[%s6368_s4 + $0x60] sm:$0xff]  }
  0x63   :  { %1166 = vmatpush2.bf16.msra.mxu0 %v4481_v43  ;;  %1264 = vmatmul.mubr.bf16.vlgmr.msra.gmra.mxu1 %v5240_v7  ;;  %v4524_v7 = vld [vmem:[%s6366_s2 + $0x248] ss:$12 sps:$4 sm:$0xff]   ;;  %v4551_v43 = vld [vmem:[%s6368_s4 + $0x58] sm:$0xff]  }
  0x64   :  { %1167 = vmatprep.subr.bf16.mxu0 %v4488_v45  ;;  %4131 = vmatpush3.bf16.msra.mxu1 %v4490_v46  ;;  %v4553_v45 = vld [vmem:[%s6368_s4 + $0x50] sm:$0xff]  }
  0x65   :  { %1303 = vmatprep.mubr.bf16.mxu1 %v5183_v52  ;;  %4132 = vmatprep.subr.bf16.mxu1 %v4494_v47  ;;  %v4500_v52 = vld [vmem:[%s6366_s2 + $0x200] ss:$12 sps:$4 sm:$0xff]   ;;  %v4554_v46 = vld [vmem:[%s6368_s4 + $0x10] sm:$0xff]  }
  0x66   :  { %v4555_v47 = vld [vmem:[%s6368_s4 + $0x48] sm:$0xff]  }
  0x67   :  { %1168 = vmatpush2.bf16.msra.mxu0 %v4486_v48  ;;  %v4556_v48 = vld [vmem:[%s6368_s4 + $0x8] sm:$0xff]  }
  0x68   :  { %1169 = vmatprep.subr.bf16.mxu0 %v4493_v49  ;;  %4133 = vmatpush3.bf16.msra.mxu1 %v4495_v50  ;;  %v4557_v49 = vld [vmem:[%s6368_s4 + $0x40] sm:$0xff]  }
  0x69   :  { %4134 = vmatprep.subr.bf16.mxu1 %v4499_v51  ;;  %v4558_v50 = vld [vmem:[%s6368_s4] sm:$0xff]   ;;  %v4559_v51 = vld [vmem:[%s6368_s4 + $0xb8] sm:$0xff]  }
  0x6b   :  { %1170 = vmatpush2.bf16.msra.mxu0 %v4491_v53  ;;  %v4560_v53 = vld [vmem:[%s6368_s4 + $0xb0] sm:$0xff]  }
  0x6c   :  { %1171 = vmatprep.subr.bf16.mxu0 %v4498_v54  ;;  %4135 = vmatpush3.bf16.msra.mxu1 %v4500_v52  ;;  %v4561_v54 = vld [vmem:[%s6368_s4 + $0xa8] sm:$0xff]   ;;  %v4562_v52 = vld [vmem:[%s6368_s4 + $0xa0] sm:$0xff]  }
  0x6d   :  { %4136 = vmatprep.subr.bf16.mxu1 %v4504_v55 }
  0x6f   :  { %1172 = vmatpush2.bf16.msra.mxu0 %v4496_v56 }
  0x70   :  { %1173 = vmatprep.subr.bf16.mxu0 %v4503_v57  ;;  %4137 = vmatpush3.bf16.msra.mxu1 %v4505_v58 }
  0x71   :  { %4138 = vmatprep.subr.bf16.mxu1 %v4509_v59 }
  0x73   :  { %1174 = vmatpush2.bf16.msra.mxu0 %v4501_v60 }
  0x74   :  { %1175 = vmatprep.subr.bf16.mxu0 %v4508_v61  ;;  %4139 = vmatpush3.bf16.msra.mxu1 %v4510_v63 }
  0x75   :  { %4140 = vmatprep.subr.bf16.mxu1 %v4514_v0 }
  0x77   :  { %1176 = vmatpush2.bf16.msra.mxu0 %v4506_v62 }
  0x78   :  { %1177 = vmatprep.subr.bf16.mxu0 %v4513_v1  ;;  %4141 = vmatpush3.bf16.msra.mxu1 %v4515_v2 }
  0x79   :  { %4142 = vmatprep.subr.bf16.mxu1 %v4519_v3 }
  0x7b   :  { %1178 = vmatpush2.bf16.msra.mxu0 %v4511_v4 }
  0x7c   :  { %1179 = vmatprep.subr.bf16.mxu0 %v4518_v5  ;;  %4143 = vmatpush3.bf16.msra.mxu1 %v4520_v6 }
  0x7d   :  { %4144 = vmatprep.subr.bf16.mxu1 %v4524_v7 }
  0x7f   :  { %1180 = vmatpush2.bf16.msra.mxu0 %v4516_v8 }
  0x80   :  { %1204 = vmatprep.subr.bf16.mxu0 %v4523_v11  ;;  %4145 = vmatpush3.bf16.msra.mxu1 %v4525_v12 }
  0x81   :  { %4256 = vmatprep.subr.bf16.mxu1 %v4945_v18 }
  0x82   :  { %1182 = vmatmul.mubr.bf16.vlgmr.msra.gmra.mxu0 %v5452_v14 }
  0x83   :  { %1205 = vmatpush1.bf16.msra.mxu0 %v4521_v13  ;;  %1222 = vmatprep.mubr.bf16.mxu0 %v4946_v19 }
  0x84   :  { %1304 = vmatmul.mubr.bf16.vlgmr.msra.gmra.mxu1 %v5248_v10  ;;  %4152 = vmatprep.subr.bf16.mxu0 %v4526_v15  ;;  %v4543_v10 = vld [vmem:[%s6368_s4 + $0x78] sm:$0xff]  }
  0x85   :  { %4257 = vmatpush3.bf16.msra.mxu1 %v4542_v16  ;;  %4258 = vmatprep.mubr.msk.bf16.mxu1 %vm4947_vm0, %v4945_v18 }
  0x86   :  { %4176 = vmatprep.subr.bf16.mxu1 %v4543_v10 }
  0x8a   :  { %3857 = vmatmul.mubr.msk.bf16.vlgmr.msra.gmra.mxu0 %vm1063_vm1, %v65_v21 }
  0x8b   :  { %4153 = vmatpush3.bf16.msra.mxu0 %v4527_v20  ;;  %1343 = vmatprep.mubr.bf16.mxu0 %v5351_v44  ;;  %v4552_v44 = vld [vmem:[%s6368_s4 + $0x18] sm:$0xff]  }
  0x8c   :  { %4154 = vmatprep.subr.bf16.mxu0 %v4528_v22  ;;  %4259 = vmatmul.mubr.msk.bf16.vlgmr.msra.gmra.mxu1 %vm1063_vm1, %v65_v21 }
  0x8d   :  { %4177 = vmatpush3.bf16.msra.mxu1 %v4544_v23 }
  0x8e   :  { %4178 = vmatprep.subr.bf16.mxu1 %v4545_v26 }
  0x8f   :  { %4155 = vmatpush3.bf16.msra.mxu0 %v4529_v24 }
  0x90   :  { %4156 = vmatprep.subr.bf16.mxu0 %v4530_v25 }
  0x91   :  { %4179 = vmatpush3.bf16.msra.mxu1 %v4546_v27 }
  0x92   :  { %4180 = vmatprep.subr.bf16.mxu1 %v4547_v29 }
  0x93   :  { %4157 = vmatpush3.bf16.msra.mxu0 %v4531_v28 }
  0x94   :  { %4158 = vmatprep.subr.bf16.mxu0 %v4532_v30 }
  0x95   :  { %4181 = vmatpush3.bf16.msra.mxu1 %v4548_v31 }
  0x96   :  { %4182 = vmatprep.subr.bf16.mxu1 %v4549_v41 }
  0x97   :  { %4159 = vmatpush3.bf16.msra.mxu0 %v4533_v32 }
  0x98   :  { %4160 = vmatprep.subr.bf16.mxu0 %v4534_v33 }
  0x99   :  { %4183 = vmatpush3.bf16.msra.mxu1 %v4550_v42 }
  0x9a   :  { %4184 = vmatprep.subr.bf16.mxu1 %v4551_v43 }
  0x9b   :  { %4161 = vmatpush3.bf16.msra.mxu0 %v4535_v34 }
  0x9c   :  { %4162 = vmatprep.subr.bf16.mxu0 %v4536_v35 }
  0x9d   :  { %4185 = vmatpush3.bf16.msra.mxu1 %v4552_v44 }
  0x9e   :  { %4186 = vmatprep.subr.bf16.mxu1 %v4553_v45 }
  0x9f   :  { %4163 = vmatpush3.bf16.msra.mxu0 %v4537_v36 }
  0xa0   :  { %4164 = vmatprep.subr.bf16.mxu0 %v4538_v37 }
  0xa1   :  { %4187 = vmatpush3.bf16.msra.mxu1 %v4554_v46 }
  0xa2   :  { %4188 = vmatprep.subr.bf16.mxu1 %v4555_v47 }
  0xa3   :  { %4165 = vmatpush3.bf16.msra.mxu0 %v4539_v38 }
  0xa4   :  { %4166 = vmatprep.subr.bf16.mxu0 %v4540_v39 }
  0xa5   :  { %4189 = vmatpush3.bf16.msra.mxu1 %v4556_v48 }
  0xa6   :  { %4190 = vmatprep.subr.bf16.mxu1 %v4557_v49 }
  0xa7   :  { %4167 = vmatpush3.bf16.msra.mxu0 %v4541_v40 }
  0xa8   :  { %4262 = vmatprep.subr.bf16.mxu0 %v4945_v18 }
  0xa9   :  { %4191 = vmatpush3.bf16.msra.mxu1 %v4558_v50 }
  0xaa   :  { %1344 = vmatmul.mubr.bf16.vlgmr.msra.gmra.mxu0 %v5452_v14 }
  0xab   :  { %4278 = vmatprep.mubr.msk.bf16.mxu0 %vm4947_vm0, %v4945_v18  ;;  %4263 = vmatpush3.bf16.msra.mxu0 %v4559_v51 }
  0xac   :  { %4264 = vmatprep.subr.bf16.mxu0 %v4945_v18 }
  0xaf   :  { %4265 = vmatpush3.bf16.msra.mxu0 %v4560_v53 }
  0xb0   :  { %4266 = vmatprep.subr.bf16.mxu0 %v4945_v18 }
  0xb3   :  { %4267 = vmatpush3.bf16.msra.mxu0 %v4561_v54 }
  0xb4   :  { %4268 = vmatprep.subr.bf16.mxu0 %v4945_v18 }
  0xb5   :  { %22 = vsyncpa [#allocation5], 0  ;;  %v4563_v55 = vld [vmem:[%s6368_s4 + $0x98] sm:$0xff]   ;;  %v4564_v56 = vld [vmem:[%s6368_s4 + $0x90] sm:$0xff]   ;;  %v264_v59 = vlaneseq }
  0xb6   :  { %v4565_v57 = vld [vmem:[%s6368_s4 + $0x88] sm:$0xff]   ;;  %v4566_v58 = vld [vmem:[%s6368_s4 + $0x80] sm:$0xff]  }
  0xb7   :  { %4269 = vmatpush3.bf16.msra.mxu0 %v4562_v52  ;;  %v5601_v60 = vshrl.u32 %v264_v59, 7  ;;  %v262_v62 = vld [vmem:[%s6367_s3] sm:$0x7]  ;;  %v4567_v59 = vld [vmem:[%s6370_s6 + $0x70] ss:$8 sps:$4 sm:$0xff]  }
  0xb8   :  { %4270 = vmatprep.subr.bf16.mxu0 %v4945_v18 }
  0xb9   :  { %v5604_v61 = vsub.s32 0, %v5601_v60  ;;  %v5610_v63 = vsub.s32 1, %v5601_v60  ;;  %v5616_v45 = vsub.s32 2, %v5601_v60 }
  0xbb   :  { %4271 = vmatpush3.bf16.msra.mxu0 %v4563_v55  ;;  %v267_v0 = vrot.slane %v262_v62, %v5604_v61  ;;  %v271_v1 = vrot.slane %v262_v62, %v5610_v63  ;;  %v275_v46 = vrot.slane %v262_v62, %v5616_v45  ;;  %v4569_v62 = vld [vmem:[%s6370_s6 + $0x74] ss:$8 sps:$4 sm:$0xff]  }
  0xbc   :  { %4272 = vmatprep.subr.bf16.mxu0 %v4945_v18  ;;  %1786 = vmatprep.subr.bf16.mxu1 %v4569_v62 }
  0xbf   :  { %4273 = vmatpush3.bf16.msra.mxu0 %v4564_v56 }
  0xc0   :  { %4274 = vmatprep.subr.bf16.mxu0 %v4945_v18 }
  0xc3   :  { %4275 = vmatpush3.bf16.msra.mxu0 %v4565_v57 }
  0xc4   :  { %4276 = vmatprep.subr.bf16.mxu0 %v4945_v18 }
  0xc7   :  { %4277 = vmatpush3.bf16.msra.mxu0 %v4566_v58 }
  0xc8   :  { %4282 = vmatprep.subr.bf16.mxu0 %v4945_v18 }
 0x102   :  { %v1101_v2 = vpop.f32.mrf.mxu0 }
 0x103   :  { %v1102_v3 = vadd.f32 %v1101_v2, %v267_v0  ;;  %v1142_v5 = vpop.f32.mrf.mxu1  ;;  %v4572_v0 = vld [vmem:[%s6370_s6 + $0x64] ss:$8 sps:$4 sm:$0xff]   ;;  %v4575_v2 = vld [vmem:[%s6370_s6 + $0x54] ss:$8 sps:$4 sm:$0xff]  }
 0x104   :  { %v1103_v4 = vpop.f32.mrf.mxu0 }
 0x105   :  { %v1104_v6 = vadd.f32 %v1103_v4, %v271_v1  ;;  %v1143_v7 = vadd.f32 %v1142_v5, %v1102_v3  ;;  %v1144_v9 = vpop.f32.mrf.mxu1  ;;  %v4570_v1 = vld [vmem:[%s6370_s6 + $0x60] ss:$8 sps:$4 sm:$0xff]   ;;  %v4573_v3 = vld [vmem:[%s6370_s6 + $0x50] ss:$8 sps:$4 sm:$0xff]   ;;  %v4578_v4 = vld [vmem:[%s6370_s6 + $0x44] ss:$8 sps:$4 sm:$0xff]  }
 0x106   :  { %v1105_v8 = vpop.f32.mrf.mxu0  ;;  %v4576_v5 = vld [vmem:[%s6370_s6 + $0x40] ss:$8 sps:$4 sm:$0xff]  }
 0x107   :  { %v1145_v11 = vadd.f32 %v1144_v9, %v1104_v6  ;;  %v1146_v13 = vpop.f32.mrf.mxu1  ;;  %v4581_v6 = vld [vmem:[%s6370_s6 + $0x34] ss:$8 sps:$4 sm:$0xff]   ;;  %v4584_v8 = vld [vmem:[%s6370_s6 + $0x24] ss:$8 sps:$4 sm:$0xff]   ;;  %v4582_v9 = vld [vmem:[%s6370_s6 + $0x20] ss:$8 sps:$4 sm:$0xff]  }
 0x108   :  { %v1106_v12 = vpop.f32.mrf.mxu0  ;;  %v4590_v13 = vld [vmem:[%s6370_s6 + $0x4] ss:$8 sps:$4 sm:$0xff]  }
 0x109   :  { %v1147_v14 = vpop.f32.mrf.mxu1  ;;  %v4585_v12 = vld [vmem:[%s6370_s6 + $0x10] ss:$8 sps:$4 sm:$0xff]  }
 0x10a   :  { %v4588_v14 = vld [vmem:[%s6370_s6] ss:$8 sps:$4 sm:$0xff]  }
 0x123   :  { %v4124_v15 = vpop.f32.mrf.mxu1 }
 0x125   :  { %v4125_v16 = vpop.f32.mrf.mxu1 }
 0x126   :  { %v4126_v17 = vadd.f32 %v4125_v16, %v4124_v15  ;;  %v4591_v15 = vld [vmem:[%s6372_s8 + $0x38] sm:$0xff]  }
 0x127   :  { %v4127_v20 = vpop.f32.mrf.mxu1 }
 0x128   :  { %v1266_v47 = vadd.f32 %v4126_v17, %v275_v46  ;;  %v4611_v46 = vld [vmem:[%s6374_s10 + $0x60] ss:$12 sps:$4 sm:$0xff]  }
 0x129   :  { %v4128_v21 = vpop.f32.mrf.mxu1 }
 0x142   :  { %v1183_v22 = vpop.f32.mrf.mxu0 }
 0x143   :  { %v1184_v28 = vadd.f32 %v1183_v22, %v1143_v7  ;;  %v4579_v7 = vld [vmem:[%s6370_s6 + $0x30] ss:$8 sps:$4 sm:$0xff]  }
 0x144   :  { %v1185_v10 = vpop.f32.mrf.mxu0  ;;  %v4146_v23 = vpop.f32.mrf.mxu1 }
 0x145   :  { %v1186_v31 = vadd.f32 %v1185_v10, %v1145_v11  ;;  %v4587_v11 = vld [vmem:[%s6370_s6 + $0x14] ss:$8 sps:$4 sm:$0xff]   ;;  %v3859_v10 = vld [vmem:[%s6369_s5] ss:$0 sm:$0xff] }
 0x146   :  { %v1187_v24 = vpop.f32.mrf.mxu0  ;;  %v4147_v25 = vpop.f32.mrf.mxu1 }
 0x147   :  { %v4148_v48 = vadd.f32 %v4147_v25, %v4146_v23 }
 0x148   :  { %v1188_v26 = vpop.f32.mrf.mxu0  ;;  %v4149_v27 = vpop.f32.mrf.mxu1 }
 0x149   :  { %v1306_v51 = vadd.f32 %v4148_v48, %v1266_v47  ;;  %v4617_v47 = vld [vmem:[%s6374_s10 + $0x4c] ss:$12 sps:$4 sm:$0xff]   ;;  %v4615_v48 = vld [vmem:[%s6374_s10 + $0x48] ss:$12 sps:$4 sm:$0xff]  }
 0x14a   :  { %v1224_v29 = vpop.f32.mrf.mxu0  ;;  %v4150_v30 = vpop.f32.mrf.mxu1 }
 0x14b   :  { %v1225_v32 = vadd.f32 %v1224_v29, %v1184_v28 }
 0x14c   :  { %v1226_v33 = vpop.f32.mrf.mxu0  ;;  %v1385_v34 = vpop.f32.mrf.mxu1 }
 0x14d   :  { %v1227_v35 = vadd.f32 %v1226_v33, %v1186_v31  ;;  %v1391_v36 = vmax.f32 %v1225_v32, 0.0  ;;  %v4592_v31 = vld [vmem:[%s6372_s8 + $0x30] sm:$0xff]   ;;  %v4593_v32 = vld [vmem:[%s6372_s8 + $0x28] sm:$0xff]   ;;  %v4594_v33 = vld [vmem:[%s6372_s8 + $0x20] sm:$0xff]  }
 0x14e   :  { %v1228_v37 = vpop.f32.mrf.mxu0  ;;  %v4260_v38 = vpop.f32.mrf.mxu1 }
 0x14f   :  { %v1392_v39 = vmax.f32 %v1227_v35, 0.0  ;;  %v1394_v43 = vpack.c.bf16 %v1391_v36, %v1391_v36  ;;  %v4596_v35 = vld [vmem:[%s6372_s8 + $0x10] sm:$0xff]   ;;  %v4597_v36 = vld [vmem:[%s6372_s8 + $0x8] sm:$0xff]   ;;  %v4598_v37 = vld [vmem:[%s6372_s8] sm:$0xff]  }
 0x150   :  { %v1229_v40 = vpop.f32.mrf.mxu0  ;;  %v1388_v41 = vpop.f32.mrf.mxu1  ;;  %v4599_v38 = vld [vmem:[%s6374_s10 + $0xa8] ss:$12 sps:$4 sm:$0xff]  }
 0x151   :  { %v1395_v42 = vpack.c.bf16 %v1392_v39, %v1392_v39  ;;  %v4601_v39 = vld [vmem:[%s6374_s10 + $0xac] ss:$12 sps:$4 sm:$0xff]   ;;  %v4605_v40 = vld [vmem:[%s6374_s10 + $0x94] ss:$12 sps:$4 sm:$0xff]   ;;  %v4603_v41 = vld [vmem:[%s6374_s10 + $0x90] ss:$12 sps:$4 sm:$0xff]  }
 0x152   :  { %v4261_v44 = vpop.f32.mrf.mxu1 }
 0x153   :  { %1628 = vmatprep.mubr.bf16.mxu1 %v1395_v42  ;;  %v4609_v42 = vld [vmem:[%s6374_s10 + $0x7c] ss:$12 sps:$4 sm:$0xff]   ;;  %v4613_v44 = vld [vmem:[%s6374_s10 + $0x64] ss:$12 sps:$4 sm:$0xff]  }
 0x154   :  { %1629 = vmatmul.mubr.bf16.vlgmr.msra.gmra.mxu1 %v1394_v43  ;;  %v4607_v43 = vld [vmem:[%s6374_s10 + $0x78] ss:$12 sps:$4 sm:$0xff]  }
 0x155   :  { %1818 = vmatprep.mubr.bf16.mxu1 %v4946_v19  ;;  %1787 = vmatpush1.bf16.msra.mxu1 %v4567_v59 }
 0x156   :  { %1788 = vmatprep.subr.bf16.mxu1 %v4572_v0 }
 0x159   :  { %1789 = vmatpush1.bf16.msra.mxu1 %v4570_v1 }
 0x15a   :  { %1790 = vmatprep.subr.bf16.mxu1 %v4575_v2 }
 0x15d   :  { %1791 = vmatpush1.bf16.msra.mxu1 %v4573_v3  ;;  %v1830_v3 = vld [vmem:[%s6365_s1] sm:$0xff] }
 0x15e   :  { %1792 = vmatprep.subr.bf16.mxu1 %v4578_v4 }
 0x161   :  { %1793 = vmatpush1.bf16.msra.mxu1 %v4576_v5 }
 0x162   :  { %1794 = vmatprep.subr.bf16.mxu1 %v4581_v6 }
 0x165   :  { %1795 = vmatpush1.bf16.msra.mxu1 %v4579_v7  ;;  %v4602_v7 = vld [vmem:[%s6374_s10 + $0xb0] ss:$12 sps:$4 sm:$0xff]  }
 0x166   :  { %1796 = vmatprep.subr.bf16.mxu1 %v4584_v8 }
 0x169   :  { %1797 = vmatpush1.bf16.msra.mxu1 %v4582_v9  ;;  %v4606_v9 = vld [vmem:[%s6374_s10 + $0x98] ss:$12 sps:$4 sm:$0xff]  }
 0x16a   :  { %v4168_v49 = vpop.f32.mrf.mxu0  ;;  %1798 = vmatprep.subr.bf16.mxu1 %v4587_v11  ;;  %v4610_v11 = vld [vmem:[%s6374_s10 + $0x80] ss:$12 sps:$4 sm:$0xff]  }
 0x16c   :  { %v4169_v50 = vpop.f32.mrf.mxu0 }
 0x16d   :  { %v4170_v53 = vadd.f32 %v4169_v50, %v4168_v49  ;;  %1799 = vmatpush1.bf16.msra.mxu1 %v4585_v12  ;;  %v4621_v49 = vld [vmem:[%s6374_s10 + $0x34] ss:$12 sps:$4 sm:$0xff]   ;;  %v4619_v50 = vld [vmem:[%s6374_s10 + $0x30] ss:$12 sps:$4 sm:$0xff]  }
 0x16e   :  { %v4171_v54 = vpop.f32.mrf.mxu0  ;;  %1800 = vmatprep.subr.bf16.mxu1 %v4590_v13  ;;  %v4614_v12 = vld [vmem:[%s6374_s10 + $0x68] ss:$12 sps:$4 sm:$0xff]   ;;  %v4618_v13 = vld [vmem:[%s6374_s10 + $0x50] ss:$12 sps:$4 sm:$0xff]  }
 0x16f   :  { %v1346_v52 = vadd.f32 %v4170_v53, %v1306_v51  ;;  %v4625_v51 = vld [vmem:[%s6374_s10 + $0x1c] ss:$12 sps:$4 sm:$0xff]   ;;  %v4623_v53 = vld [vmem:[%s6374_s10 + $0x18] ss:$12 sps:$4 sm:$0xff]   ;;  %v1694_v54 = vld [vmem:[%s6371_s7] sm:$0x3] }
 0x170   :  { %v4172_v55 = vpop.f32.mrf.mxu0 }
 0x171   :  { %v1386_v56 = vadd.f32 %v1385_v34, %v1346_v52  ;;  %1801 = vmatpush1.bf16.msra.mxu1 %v4588_v14  ;;  %v4595_v34 = vld [vmem:[%s6372_s8 + $0x18] sm:$0xff]   ;;  %v1699_v52 = vrot.slane %v1694_v54, %v5604_v61  ;;  %v1703_v55 = vrot.slane %v1694_v54, %v5610_v63 }
 0x172   :  { %2127 = vmatprep.subr.bf16.mxu1 %v4601_v39  ;;  %v4622_v14 = vld [vmem:[%s6374_s10 + $0x38] ss:$12 sps:$4 sm:$0xff]  }
 0x173   :  { %v1393_v57 = vmax.f32 %v1386_v56, 0.0  ;;  %v4667_v39 = vld [vmem:[%s6376_s12 + $0x498] ss:$28 sps:$4 sm:$0xff]  }
 0x174   :  { %v4651_v54 = vld [vmem:[%s6376_s12 + $0x3c] ss:$28 sps:$4 sm:$0xff]  }
 0x175   :  { %v1396_v58 = vpack.c.bf16 %v1393_v57, %v1393_v57 }
 0x177   :  { %4279 = vmatmul.mubr.bf16.vlgmr.msra.gmra.mxu0 %v1396_v58 }
 0x178   :  { %4298 = vmatprep.mubr.msk.bf16.mxu0 %vm4947_vm0, %v4945_v18  ;;  %4283 = vmatpush3.bf16.msra.mxu0 %v4591_v15  ;;  %v4626_v15 = vld [vmem:[%s6374_s10 + $0x20] ss:$12 sps:$4 sm:$0xff]  }
 0x179   :  { %4284 = vmatprep.subr.bf16.mxu0 %v4945_v18 }
 0x17c   :  { %4285 = vmatpush3.bf16.msra.mxu0 %v4592_v31  ;;  %v4636_v31 = vld [vmem:[%s6376_s12 + $0x154] ss:$28 sps:$4 sm:$0xff]  }
 0x17d   :  { %4286 = vmatprep.subr.bf16.mxu0 %v4945_v18 }
 0x180   :  { %4287 = vmatpush3.bf16.msra.mxu0 %v4593_v32  ;;  %v4663_v32 = vld [vmem:[%s6376_s12 + $0x4d4] ss:$28 sps:$4 sm:$0xff]  }
 0x181   :  { %4288 = vmatprep.subr.bf16.mxu0 %v4945_v18 }
 0x184   :  { %4289 = vmatpush3.bf16.msra.mxu0 %v4594_v33 }
 0x185   :  { %4290 = vmatprep.subr.bf16.mxu0 %v4945_v18 }
 0x188   :  { %4291 = vmatpush3.bf16.msra.mxu0 %v4595_v34  ;;  %v4634_v34 = vld [vmem:[%s6376_s12 + $0x150] ss:$28 sps:$4 sm:$0xff]  }
 0x189   :  { %4292 = vmatprep.subr.bf16.mxu0 %v4945_v18 }
 0x18c   :  { %4293 = vmatpush3.bf16.msra.mxu0 %v4596_v35  ;;  %v4661_v35 = vld [vmem:[%s6376_s12 + $0x4d0] ss:$28 sps:$4 sm:$0xff]  }
 0x18d   :  { %4294 = vmatprep.subr.bf16.mxu0 %v4945_v18 }
 0x190   :  { %4295 = vmatpush3.bf16.msra.mxu0 %v4597_v36  ;;  %v4639_v36 = vld [vmem:[%s6376_s12 + $0x11c] ss:$28 sps:$4 sm:$0xff]  }
 0x191   :  { %4296 = vmatprep.subr.bf16.mxu0 %v4945_v18 }
 0x194   :  { %4297 = vmatpush3.bf16.msra.mxu0 %v4598_v37  ;;  %v4669_v37 = vld [vmem:[%s6376_s12 + $0x49c] ss:$28 sps:$4 sm:$0xff]  }
 0x195   :  { %4302 = vmatprep.subr.bf16.mxu0 %v4945_v18 }
 0x214   :  { %v4192_v16 = vpop.f32.mrf.mxu1 }
 0x216   :  { %v4193_v17 = vpop.f32.mrf.mxu1 }
 0x217   :  { %v4194_v22 = vadd.f32 %v4193_v17, %v4192_v16  ;;  %v4629_v16 = vld [vmem:[%s6374_s10 + $0x4] ss:$12 sps:$4 sm:$0xff]   ;;  %v4627_v17 = vld [vmem:[%s6374_s10] ss:$12 sps:$4 sm:$0xff]  }
 0x218   :  { %v4195_v20 = vpop.f32.mrf.mxu1 }
 0x219   :  { %v1631_v23 = vadd.f32 %v4194_v22, %v3859_v10  ;;  %v4630_v20 = vld [vmem:[%s6374_s10 + $0x8] ss:$12 sps:$4 sm:$0xff]   ;;  %v3900_v10 = vld [vmem:[%s6373_s9] ss:$0 sm:$0xff] }
 0x21a   :  { %v4196_v21 = vpop.f32.mrf.mxu1  ;;  %v4657_v22 = vld [vmem:[%s6376_s12 + $0x50c] ss:$28 sps:$4 sm:$0xff]  }
 0x21b   :  { %v4633_v21 = vld [vmem:[%s6376_s12 + $0x18c] ss:$28 sps:$4 sm:$0xff]  }
 0x237   :  { %v1670_v24 = vpop.f32.mrf.mxu0 }
 0x238   :  { %v1671_v25 = vadd.f32 %v1670_v24, %v1631_v23 }
 0x239   :  { %v4280_v26 = vpop.f32.mrf.mxu0 }
 0x23a   :  { %v1676_v27 = vmax.f32 %v1671_v25, 0.0 }
 0x23b   :  { %v1673_v28 = vpop.f32.mrf.mxu0 }
 0x23c   :  { %v1677_v29 = vpack.c.bf16 %v1676_v27, %v1676_v27  ;;  %v4631_v28 = vld [vmem:[%s6376_s12 + $0x188] ss:$28 sps:$4 sm:$0xff]  }
 0x23d   :  { %v4281_v30 = vpop.f32.mrf.mxu0 }
 0x23e   :  { %1819 = vmatmul.mubr.bf16.vlgmr.msra.gmra.mxu1 %v1677_v29  ;;  %v4655_v29 = vld [vmem:[%s6376_s12 + $0x508] ss:$28 sps:$4 sm:$0xff]  }
 0x23f   :  { %2159 = vmatprep.mubr.bf16.mxu1 %v4946_v19  ;;  %2128 = vmatpush1.bf16.msra.mxu1 %v4599_v38  ;;  %v4637_v38 = vld [vmem:[%s6376_s12 + $0x118] ss:$28 sps:$4 sm:$0xff]  }
 0x240   :  { %2129 = vmatprep.subr.bf16.mxu1 %v4605_v40  ;;  %v4642_v40 = vld [vmem:[%s6376_s12 + $0xe4] ss:$28 sps:$4 sm:$0xff]  }
 0x243   :  { %2130 = vmatpush1.bf16.msra.mxu1 %v4603_v41  ;;  %v4675_v41 = vld [vmem:[%s6376_s12 + $0x464] ss:$28 sps:$4 sm:$0xff]  }
 0x244   :  { %2131 = vmatprep.subr.bf16.mxu1 %v4609_v42  ;;  %v4640_v42 = vld [vmem:[%s6376_s12 + $0xe0] ss:$28 sps:$4 sm:$0xff]  }
 0x247   :  { %2132 = vmatpush1.bf16.msra.mxu1 %v4607_v43  ;;  %v4673_v43 = vld [vmem:[%s6376_s12 + $0x460] ss:$28 sps:$4 sm:$0xff]  }
 0x248   :  { %2133 = vmatprep.subr.bf16.mxu1 %v4613_v44  ;;  %v4645_v44 = vld [vmem:[%s6376_s12 + $0xac] ss:$28 sps:$4 sm:$0xff]  }
 0x24b   :  { %2134 = vmatpush1.bf16.msra.mxu1 %v4611_v46  ;;  %v4681_v46 = vld [vmem:[%s6376_s12 + $0x42c] ss:$28 sps:$4 sm:$0xff]  }
 0x24c   :  { %2135 = vmatprep.subr.bf16.mxu1 %v4617_v47  ;;  %v4643_v47 = vld [vmem:[%s6376_s12 + $0xa8] ss:$28 sps:$4 sm:$0xff]  }
 0x24f   :  { %2136 = vmatpush1.bf16.msra.mxu1 %v4615_v48  ;;  %v4679_v48 = vld [vmem:[%s6376_s12 + $0x428] ss:$28 sps:$4 sm:$0xff]  }
 0x250   :  { %2137 = vmatprep.subr.bf16.mxu1 %v4621_v49  ;;  %v4648_v49 = vld [vmem:[%s6376_s12 + $0x74] ss:$28 sps:$4 sm:$0xff]  }
 0x253   :  { %2138 = vmatpush1.bf16.msra.mxu1 %v4619_v50  ;;  %v4687_v50 = vld [vmem:[%s6376_s12 + $0x3f4] ss:$28 sps:$4 sm:$0xff]  }
 0x254   :  { %2139 = vmatprep.subr.bf16.mxu1 %v4625_v51  ;;  %v4646_v51 = vld [vmem:[%s6376_s12 + $0x70] ss:$28 sps:$4 sm:$0xff]  }
 0x257   :  { %2140 = vmatpush1.bf16.msra.mxu1 %v4623_v53  ;;  %v4685_v53 = vld [vmem:[%s6376_s12 + $0x3f0] ss:$28 sps:$4 sm:$0xff]  }
 0x258   :  { %2141 = vmatprep.subr.bf16.mxu1 %v4629_v16  ;;  %v4700_v16 = vld [vmem:[%s6376_s12 + $0x1c0] ss:$28 sps:$4 sm:$0xff]  }
 0x25b   :  { %2142 = vmatpush1.bf16.msra.mxu1 %v4627_v17  ;;  %v4705_v17 = vld [vmem:[%s6376_s12 + $0x194] ss:$28 sps:$4 sm:$0xff]  }
 0x25c   :  { %3307 = vmatprep.subr.bf16.mxu1 %v4633_v21  ;;  %v1982_v21 = vld [vmem:[%s6375_s11] sm:$0x7] }
 0x2fe   :  { %v1820_v56 = vpop.f32.mrf.mxu1 }
 0x2ff   :  { %v1821_v57 = vadd.f32 %v1820_v56, %v1699_v52  ;;  %v4693_v52 = vld [vmem:[%s6376_s12 + $0x3bc] ss:$28 sps:$4 sm:$0xff]  }
 0x300   :  { %v1822_v58 = vpop.f32.mrf.mxu1  ;;  %v4691_v56 = vld [vmem:[%s6376_s12 + $0x3b8] ss:$28 sps:$4 sm:$0xff]  }
 0x301   :  { %1834 = vst [vmem:[#allocation4 + $0x8] sm:$0xff] %v1821_v57  ;;  %v1823_v59 = vadd.f32 %v1822_v58, %v1703_v55  ;;  %v4649_v55 = vld [vmem:[%s6376_s12 + $0x38] ss:$28 sps:$4 sm:$0xff]   ;;  %v4652_v58 = vld [vmem:[%s6376_s12] ss:$28 sps:$4 sm:$0xff]  }
 0x302   :  { %v1824_v62 = vpop.f32.mrf.mxu1 }
 0x303   :  { %v1827_v0 = vmul.f32 0.5, %v1823_v59  ;;  %1835 = vst [vmem:[#allocation4 + $0x10] sm:$0xff] %v1823_v59  ;;  %v4660_v59 = vld [vmem:[%s6376_s12 + $0x34c] ss:$28 sps:$4 sm:$0xff]  }
 0x304   :  { %v1825_v1 = vpop.f32.mrf.mxu1  ;;  %v4658_v62 = vld [vmem:[%s6376_s12 + $0x348] ss:$28 sps:$4 sm:$0xff]  }
 0x305   :  { %v1828_v2 = vmul.f32 1.442695, %v1827_v0  ;;  %v4666_v0 = vld [vmem:[%s6376_s12 + $0x314] ss:$28 sps:$4 sm:$0xff]  }
 0x306   :  { %v4664_v1 = vld [vmem:[%s6376_s12 + $0x310] ss:$28 sps:$4 sm:$0xff]  }
 0x307   :  { %4871 = vpow2.f32 %v1828_v2  ;;  %v4672_v2 = vld [vmem:[%s6376_s12 + $0x2dc] ss:$28 sps:$4 sm:$0xff]  }
 0x314   :  { %v4872_v4 = vpop.eup %4871 }
 0x315   :  { %v1831_v5 = vmul.f32 %v4872_v4, %v1830_v3  ;;  %v4670_v3 = vld [vmem:[%s6376_s12 + $0x2d8] ss:$28 sps:$4 sm:$0xff]   ;;  %v4678_v4 = vld [vmem:[%s6376_s12 + $0x2a4] ss:$28 sps:$4 sm:$0xff]  }
 0x317   :  { %v1832_v6 = vadd.f32 %v1831_v5, %v1821_v57  ;;  %v4654_v57 = vld [vmem:[%s6376_s12 + $0x4] ss:$28 sps:$4 sm:$0xff]  }
 0x318   :  { %v4676_v5 = vld [vmem:[%s6376_s12 + $0x2a0] ss:$28 sps:$4 sm:$0xff]  }
 0x319   :  { %v1836_v8 = vpack.c.bf16 %v1832_v6, %v1832_v6  ;;  %1833 = vst [vmem:[#allocation4] sm:$0xff] %v1832_v6  ;;  %v4684_v6 = vld [vmem:[%s6376_s12 + $0x26c] ss:$28 sps:$4 sm:$0xff]  }
 0x31b   :  { %4299 = vmatmul.mubr.bf16.vlgmr.msra.gmra.mxu0 %v1836_v8  ;;  %v4690_v8 = vld [vmem:[%s6376_s12 + $0x234] ss:$28 sps:$4 sm:$0xff]  }
 0x31c   :  { %4303 = vmatpush3.bf16.msra.mxu0 %v4602_v7  ;;  %4318 = vmatprep.mubr.msk.bf16.mxu0 %vm4947_vm0, %v4945_v18  ;;  %v4682_v7 = vld [vmem:[%s6376_s12 + $0x268] ss:$28 sps:$4 sm:$0xff]  }
 0x31d   :  { %4304 = vmatprep.subr.bf16.mxu0 %v4945_v18 }
 0x320   :  { %4305 = vmatpush3.bf16.msra.mxu0 %v4606_v9  ;;  %v4688_v9 = vld [vmem:[%s6376_s12 + $0x230] ss:$28 sps:$4 sm:$0xff]  }
 0x321   :  { %4306 = vmatprep.subr.bf16.mxu0 %v4945_v18 }
 0x324   :  { %4307 = vmatpush3.bf16.msra.mxu0 %v4610_v11  ;;  %v4696_v11 = vld [vmem:[%s6376_s12 + $0x1fc] ss:$28 sps:$4 sm:$0xff]  }
 0x325   :  { %4308 = vmatprep.subr.bf16.mxu0 %v4945_v18 }
 0x328   :  { %4309 = vmatpush3.bf16.msra.mxu0 %v4614_v12  ;;  %v4694_v12 = vld [vmem:[%s6376_s12 + $0x1f8] ss:$28 sps:$4 sm:$0xff]  }
 0x329   :  { %4310 = vmatprep.subr.bf16.mxu0 %v4945_v18 }
 0x32c   :  { %4311 = vmatpush3.bf16.msra.mxu0 %v4618_v13  ;;  %v4699_v13 = vld [vmem:[%s6376_s12 + $0x384] ss:$28 sps:$4 sm:$0xff]  }
 0x32d   :  { %4312 = vmatprep.subr.bf16.mxu0 %v4945_v18 }
 0x330   :  { %4313 = vmatpush3.bf16.msra.mxu0 %v4622_v14  ;;  %v4697_v14 = vld [vmem:[%s6376_s12 + $0x380] ss:$28 sps:$4 sm:$0xff]  }
 0x331   :  { %4314 = vmatprep.subr.bf16.mxu0 %v4945_v18 }
 0x334   :  { %4315 = vmatpush3.bf16.msra.mxu0 %v4626_v15  ;;  %v4702_v15 = vld [vmem:[%s6376_s12 + $0x1c4] ss:$28 sps:$4 sm:$0xff]  }
 0x335   :  { %4316 = vmatprep.subr.bf16.mxu0 %v4945_v18 }
 0x338   :  { %4317 = vmatpush3.bf16.msra.mxu0 %v4630_v20  ;;  %v4708_v20 = vld [vmem:[%s6376_s12 + $0x514] ss:$28 sps:$4 sm:$0xff]  }
 0x339   :  { %3348 = vmatprep.subr.bf16.mxu0 %v4657_v22  ;;  %v1987_v22 = vrot.slane %v1982_v21, %v5604_v61 }
 0x3db   :  { %v1942_v23 = vpop.f32.mrf.mxu0 }
 0x3dc   :  { %v1943_v24 = vadd.f32 %v3900_v10, %v1942_v23  ;;  %v1995_v10 = vrot.slane %v1982_v21, %v5616_v45  ;;  %v1991_v23 = vrot.slane %v1982_v21, %v5610_v63  ;;  %v4765_v21 = vld [vmem:[%s6376_s12 + $0x2e4] ss:$28 sps:$4 sm:$0xff]  }
 0x3dd   :  { %v4300_v25 = vpop.f32.mrf.mxu0 }
 0x3de   :  { %v1948_v26 = vmax.f32 %v1943_v24, 0.0 }
 0x3df   :  { %v1945_v27 = vpop.f32.mrf.mxu0 }
 0x3e0   :  { %v1949_v30 = vpack.c.bf16 %v1948_v26, %v1948_v26 }
 0x3e1   :  { %v4301_v33 = vpop.f32.mrf.mxu0 }
 0x3e2   :  { %2160 = vmatmul.mubr.bf16.vlgmr.msra.gmra.mxu1 %v1949_v30  ;;  %4319 = vmatmul.mubr.bf16.vlgmr.msra.gmra.mxu0 %v1949_v30 }
 0x3e3   :  { %3308 = vmatpush1.bf16.msra.mxu1 %v4631_v28  ;;  %3349 = vmatpush1.bf16.msra.mxu0 %v4655_v29 }
 0x3e4   :  { %3309 = vmatprep.subr.bf16.mxu1 %v4636_v31  ;;  %3350 = vmatprep.subr.bf16.mxu0 %v4663_v32 }
 0x3e5   :  { %3380 = vmatprep.mubr.bf16.mxu0 %v4946_v19 }
 0x3e7   :  { %3310 = vmatpush1.bf16.msra.mxu1 %v4634_v34  ;;  %3351 = vmatpush1.bf16.msra.mxu0 %v4661_v35  ;;  %v4703_v35 = vld [vmem:[%s6376_s12 + $0x190] ss:$28 sps:$4 sm:$0xff]  }
 0x3e8   :  { %3311 = vmatprep.subr.bf16.mxu1 %v4639_v36  ;;  %3352 = vmatprep.subr.bf16.mxu0 %v4669_v37 }
 0x3eb   :  { %3312 = vmatpush1.bf16.msra.mxu1 %v4637_v38  ;;  %3353 = vmatpush1.bf16.msra.mxu0 %v4667_v39 }
 0x3ec   :  { %3313 = vmatprep.subr.bf16.mxu1 %v4642_v40  ;;  %3354 = vmatprep.subr.bf16.mxu0 %v4675_v41  ;;  %v4711_v40 = vld [vmem:[%s6376_s12 + $0x15c] ss:$28 sps:$4 sm:$0xff]  }
 0x3ef   :  { %3314 = vmatpush1.bf16.msra.mxu1 %v4640_v42  ;;  %3355 = vmatpush1.bf16.msra.mxu0 %v4673_v43  ;;  %v4706_v42 = vld [vmem:[%s6376_s12 + $0x510] ss:$28 sps:$4 sm:$0xff]  }
 0x3f0   :  { %3315 = vmatprep.subr.bf16.mxu1 %v4645_v44  ;;  %3356 = vmatprep.subr.bf16.mxu0 %v4681_v46  ;;  %v4709_v44 = vld [vmem:[%s6376_s12 + $0x158] ss:$28 sps:$4 sm:$0xff]  }
 0x3f1   :  { %v4714_v46 = vld [vmem:[%s6376_s12 + $0x4dc] ss:$28 sps:$4 sm:$0xff]  }
 0x3f3   :  { %3316 = vmatpush1.bf16.msra.mxu1 %v4643_v47  ;;  %3357 = vmatpush1.bf16.msra.mxu0 %v4679_v48  ;;  %v4717_v47 = vld [vmem:[%s6376_s12 + $0x124] ss:$28 sps:$4 sm:$0xff]   ;;  %v4712_v48 = vld [vmem:[%s6376_s12 + $0x4d8] ss:$28 sps:$4 sm:$0xff]  }
 0x3f4   :  { %3317 = vmatprep.subr.bf16.mxu1 %v4648_v49  ;;  %3358 = vmatprep.subr.bf16.mxu0 %v4687_v50  ;;  %v4715_v49 = vld [vmem:[%s6376_s12 + $0x120] ss:$28 sps:$4 sm:$0xff]  }
 0x3f5   :  { %v4720_v50 = vld [vmem:[%s6376_s12 + $0x4a4] ss:$28 sps:$4 sm:$0xff]  }
 0x3f7   :  { %3318 = vmatpush1.bf16.msra.mxu1 %v4646_v51  ;;  %3359 = vmatpush1.bf16.msra.mxu0 %v4685_v53  ;;  %v4723_v51 = vld [vmem:[%s6376_s12 + $0xec] ss:$28 sps:$4 sm:$0xff]   ;;  %v4718_v53 = vld [vmem:[%s6376_s12 + $0x4a0] ss:$28 sps:$4 sm:$0xff]  }
 0x3f8   :  { %3319 = vmatprep.subr.bf16.mxu1 %v4651_v54  ;;  %3360 = vmatprep.subr.bf16.mxu0 %v4693_v52  ;;  %v4721_v54 = vld [vmem:[%s6376_s12 + $0xe8] ss:$28 sps:$4 sm:$0xff]  }
 0x3f9   :  { %v4726_v52 = vld [vmem:[%s6376_s12 + $0x46c] ss:$28 sps:$4 sm:$0xff]  }
 0x3fb   :  { %3320 = vmatpush1.bf16.msra.mxu1 %v4649_v55  ;;  %3361 = vmatpush1.bf16.msra.mxu0 %v4691_v56  ;;  %v4729_v55 = vld [vmem:[%s6376_s12 + $0xb4] ss:$28 sps:$4 sm:$0xff]   ;;  %v4724_v56 = vld [vmem:[%s6376_s12 + $0x468] ss:$28 sps:$4 sm:$0xff]  }
 0x3fc   :  { %3321 = vmatprep.subr.bf16.mxu1 %v4654_v57  ;;  %3362 = vmatprep.subr.bf16.mxu0 %v4699_v13  ;;  %v4727_v57 = vld [vmem:[%s6376_s12 + $0xb0] ss:$28 sps:$4 sm:$0xff]  }
 0x3fd   :  { %v4751_v13 = vld [vmem:[%s6376_s12 + $0x350] ss:$28 sps:$4 sm:$0xff]  }
 0x3ff   :  { %3322 = vmatpush1.bf16.msra.mxu1 %v4652_v58  ;;  %3363 = vmatpush1.bf16.msra.mxu0 %v4697_v14  ;;  %v4732_v58 = vld [vmem:[%s6376_s12 + $0x434] ss:$28 sps:$4 sm:$0xff]   ;;  %v4756_v14 = vld [vmem:[%s6376_s12 + $0x19c] ss:$28 sps:$4 sm:$0xff]  }
 0x400   :  { %3323 = vmatprep.subr.bf16.mxu1 %v4660_v59  ;;  %3389 = vmatprep.subr.bf16.mxu0 %v4705_v17  ;;  %v4735_v59 = vld [vmem:[%s6376_s12 + $0x7c] ss:$28 sps:$4 sm:$0xff]  }
 0x401   :  { %v4757_v17 = vld [vmem:[%s6376_s12 + $0x318] ss:$28 sps:$4 sm:$0xff]  }
 0x403   :  { %3324 = vmatpush2.bf16.msra.mxu1 %v4658_v62  ;;  %v4730_v62 = vld [vmem:[%s6376_s12 + $0x430] ss:$28 sps:$4 sm:$0xff]  }
 0x404   :  { %3325 = vmatprep.subr.bf16.mxu1 %v4666_v0  ;;  %v4733_v0 = vld [vmem:[%s6376_s12 + $0x78] ss:$28 sps:$4 sm:$0xff]  }
 0x407   :  { %3326 = vmatpush2.bf16.msra.mxu1 %v4664_v1  ;;  %v4738_v1 = vld [vmem:[%s6376_s12 + $0x3fc] ss:$28 sps:$4 sm:$0xff]  }
 0x408   :  { %3327 = vmatprep.subr.bf16.mxu1 %v4672_v2  ;;  %v4741_v2 = vld [vmem:[%s6376_s12 + $0x44] ss:$28 sps:$4 sm:$0xff]  }
 0x40b   :  { %3328 = vmatpush2.bf16.msra.mxu1 %v4670_v3  ;;  %v4736_v3 = vld [vmem:[%s6376_s12 + $0x3f8] ss:$28 sps:$4 sm:$0xff]  }
 0x40c   :  { %3329 = vmatprep.subr.bf16.mxu1 %v4678_v4  ;;  %v4739_v4 = vld [vmem:[%s6376_s12 + $0x40] ss:$28 sps:$4 sm:$0xff]  }
 0x40f   :  { %3330 = vmatpush2.bf16.msra.mxu1 %v4676_v5  ;;  %v4744_v5 = vld [vmem:[%s6376_s12 + $0x3c4] ss:$28 sps:$4 sm:$0xff]  }
 0x410   :  { %3331 = vmatprep.subr.bf16.mxu1 %v4684_v6  ;;  %v4747_v6 = vld [vmem:[%s6376_s12 + $0xc] ss:$28 sps:$4 sm:$0xff]  }
 0x413   :  { %3332 = vmatpush2.bf16.msra.mxu1 %v4682_v7  ;;  %v4742_v7 = vld [vmem:[%s6376_s12 + $0x3c0] ss:$28 sps:$4 sm:$0xff]  }
 0x414   :  { %3333 = vmatprep.subr.bf16.mxu1 %v4690_v8  ;;  %v4745_v8 = vld [vmem:[%s6376_s12 + $0x8] ss:$28 sps:$4 sm:$0xff]  }
 0x417   :  { %3334 = vmatpush2.bf16.msra.mxu1 %v4688_v9  ;;  %v4750_v9 = vld [vmem:[%s6376_s12 + $0x38c] ss:$28 sps:$4 sm:$0xff]  }
 0x418   :  { %3335 = vmatprep.subr.bf16.mxu1 %v4696_v11  ;;  %v4753_v11 = vld [vmem:[%s6376_s12 + $0x354] ss:$28 sps:$4 sm:$0xff]  }
 0x41b   :  { %3336 = vmatpush2.bf16.msra.mxu1 %v4694_v12  ;;  %v4748_v12 = vld [vmem:[%s6376_s12 + $0x388] ss:$28 sps:$4 sm:$0xff]  }
 0x41c   :  { %3337 = vmatprep.subr.bf16.mxu1 %v4702_v15  ;;  %v4759_v15 = vld [vmem:[%s6376_s12 + $0x31c] ss:$28 sps:$4 sm:$0xff]  }
 0x41f   :  { %3338 = vmatpush2.bf16.msra.mxu1 %v4700_v16  ;;  %v4754_v16 = vld [vmem:[%s6376_s12 + $0x198] ss:$28 sps:$4 sm:$0xff]  }
 0x420   :  { %3430 = vmatprep.subr.bf16.mxu1 %v4708_v20  ;;  %v4762_v20 = vld [vmem:[%s6376_s12 + $0x164] ss:$28 sps:$4 sm:$0xff]  }
 0x4a2   :  { %v2161_v24 = vpop.f32.mrf.mxu1  ;;  %v2202_v25 = vpop.f32.mrf.mxu0 }
 0x4a3   :  { %v2162_v26 = vadd.f32 %v2161_v24, %v1987_v22  ;;  %v2203_v27 = vadd.f32 %v2202_v25, %v1995_v10  ;;  %v4760_v22 = vld [vmem:[%s6376_s12 + $0x160] ss:$28 sps:$4 sm:$0xff]   ;;  %v4771_v24 = vld [vmem:[%s6376_s12 + $0x2ac] ss:$28 sps:$4 sm:$0xff]  }
 0x4a4   :  { %v2163_v28 = vpop.f32.mrf.mxu1  ;;  %v4320_v29 = vpop.f32.mrf.mxu0  ;;  %v4763_v10 = vld [vmem:[%s6376_s12 + $0x2e0] ss:$28 sps:$4 sm:$0xff]   ;;  %v4766_v25 = vld [vmem:[%s6376_s12 + $0x128] ss:$28 sps:$4 sm:$0xff]  }
 0x4a5   :  { %v2210_v30 = vmax.f32 %v2203_v27, 0.0  ;;  %v2164_v31 = vadd.f32 %v2163_v28, %v1991_v23  ;;  %v2208_v32 = vmax.f32 %v2162_v26, 0.0  ;;  %v4768_v23 = vld [vmem:[%s6376_s12 + $0x12c] ss:$28 sps:$4 sm:$0xff]   ;;  %v4774_v27 = vld [vmem:[%s6376_s12 + $0xf4] ss:$28 sps:$4 sm:$0xff]  }
 0x4a6   :  { %v2165_v33 = vpop.f32.mrf.mxu1  ;;  %v2205_v34 = vpop.f32.mrf.mxu0  ;;  %v4769_v26 = vld [vmem:[%s6376_s12 + $0x2a8] ss:$28 sps:$4 sm:$0xff]   ;;  %v4777_v28 = vld [vmem:[%s6376_s12 + $0x274] ss:$28 sps:$4 sm:$0xff]  }
 0x4a7   :  { %v5957_v36 = vpack.c.bf16 %v2210_v30, %v2210_v30  ;;  %v2209_v37 = vmax.f32 %v2164_v31, 0.0  ;;  %v5968_v43 = vpack.c.bf16 %v2208_v32, %v2208_v32  ;;  %v4772_v29 = vld [vmem:[%s6376_s12 + $0xf0] ss:$28 sps:$4 sm:$0xff]   ;;  %v4780_v31 = vld [vmem:[%s6376_s12 + $0xbc] ss:$28 sps:$4 sm:$0xff]  }
 0x4a8   :  { %v2166_v38 = vpop.f32.mrf.mxu1  ;;  %v4321_v39 = vpop.f32.mrf.mxu0  ;;  %v4775_v30 = vld [vmem:[%s6376_s12 + $0x270] ss:$28 sps:$4 sm:$0xff]   ;;  %v4783_v32 = vld [vmem:[%s6376_s12 + $0x23c] ss:$28 sps:$4 sm:$0xff]  }
 0x4a9   :  { %v5962_v41 = vpack.c.bf16 %v2209_v37, %v2209_v37  ;;  %3381 = vmatmul.mubr.bf16.vlgmr.msra.gmra.mxu0 %v5957_v36  ;;  %v4778_v33 = vld [vmem:[%s6376_s12 + $0xb8] ss:$28 sps:$4 sm:$0xff]   ;;  %v4789_v37 = vld [vmem:[%s6376_s12 + $0x204] ss:$28 sps:$4 sm:$0xff]  }
 0x4aa   :  { %3390 = vmatpush1.bf16.msra.mxu0 %v4703_v35  ;;  %v4781_v34 = vld [vmem:[%s6376_s12 + $0x238] ss:$28 sps:$4 sm:$0xff]   ;;  %v4786_v35 = vld [vmem:[%s6376_s12 + $0x84] ss:$28 sps:$4 sm:$0xff]  }
 0x4ab   :  { %3339 = vmatprep.mubr.bf16.mxu1 %v5962_v41  ;;  %3421 = vmatprep.mubr.bf16.mxu0 %v5962_v41  ;;  %v4784_v38 = vld [vmem:[%s6376_s12 + $0x80] ss:$28 sps:$4 sm:$0xff]  }
 0x4ac   :  { %3340 = vmatmul.mubr.bf16.vlgmr.msra.gmra.mxu1 %v5968_v43  ;;  %3391 = vmatprep.subr.bf16.mxu0 %v4711_v40  ;;  %v4787_v39 = vld [vmem:[%s6376_s12 + $0x200] ss:$28 sps:$4 sm:$0xff]   ;;  %v4792_v40 = vld [vmem:[%s6376_s12 + $0x4c] ss:$28 sps:$4 sm:$0xff]  }
 0x4ad   :  { %3431 = vmatpush1.bf16.msra.mxu1 %v4706_v42  ;;  %3462 = vmatprep.mubr.bf16.mxu1 %v4946_v19  ;;  %v4795_v42 = vld [vmem:[%s6376_s12 + $0x1cc] ss:$28 sps:$4 sm:$0xff]  }
 0x4ae   :  { %3392 = vmatpush1.bf16.msra.mxu0 %v4709_v44  ;;  %3432 = vmatprep.subr.bf16.mxu1 %v4714_v46  ;;  %v4790_v44 = vld [vmem:[%s6376_s12 + $0x48] ss:$28 sps:$4 sm:$0xff]  }
 0x4af   :  { %3393 = vmatprep.subr.bf16.mxu0 %v4717_v47  ;;  %v4793_v46 = vld [vmem:[%s6376_s12 + $0x1c8] ss:$28 sps:$4 sm:$0xff]   ;;  %v4798_v47 = vld [vmem:[%s6376_s12 + $0x14] ss:$28 sps:$4 sm:$0xff]  }
 0x4b1   :  { %3433 = vmatpush1.bf16.msra.mxu1 %v4712_v48  ;;  %v4801_v48 = vld [vmem:[%s6376_s12 + $0x51c] ss:$28 sps:$4 sm:$0xff]  }
 0x4b2   :  { %3394 = vmatpush1.bf16.msra.mxu0 %v4715_v49  ;;  %3434 = vmatprep.subr.bf16.mxu1 %v4720_v50  ;;  %v4796_v49 = vld [vmem:[%s6376_s12 + $0x10] ss:$28 sps:$4 sm:$0xff]   ;;  %v4799_v50 = vld [vmem:[%s6376_s12 + $0x518] ss:$28 sps:$4 sm:$0xff]  }
 0x4b3   :  { %3395 = vmatprep.subr.bf16.mxu0 %v4723_v51  ;;  %v4804_v51 = vld [vmem:[%s6376_s12 + $0x35c] ss:$28 sps:$4 sm:$0xff]  }
 0x4b5   :  { %3435 = vmatpush1.bf16.msra.mxu1 %v4718_v53  ;;  %v4807_v53 = vld [vmem:[%s6376_s12 + $0x4e4] ss:$28 sps:$4 sm:$0xff]  }
 0x4b6   :  { %3396 = vmatpush1.bf16.msra.mxu0 %v4721_v54  ;;  %3436 = vmatprep.subr.bf16.mxu1 %v4726_v52  ;;  %v4802_v54 = vld [vmem:[%s6376_s12 + $0x358] ss:$28 sps:$4 sm:$0xff]   ;;  %v4805_v52 = vld [vmem:[%s6376_s12 + $0x4e0] ss:$28 sps:$4 sm:$0xff]  }
 0x4b7   :  { %3397 = vmatprep.subr.bf16.mxu0 %v4729_v55  ;;  %v4810_v55 = vld [vmem:[%s6376_s12 + $0x324] ss:$28 sps:$4 sm:$0xff]  }
 0x4b9   :  { %3437 = vmatpush1.bf16.msra.mxu1 %v4724_v56  ;;  %v4813_v56 = vld [vmem:[%s6376_s12 + $0x4ac] ss:$28 sps:$4 sm:$0xff]  }
 0x4ba   :  { %3398 = vmatpush1.bf16.msra.mxu0 %v4727_v57  ;;  %3438 = vmatprep.subr.bf16.mxu1 %v4732_v58  ;;  %v4808_v57 = vld [vmem:[%s6376_s12 + $0x320] ss:$28 sps:$4 sm:$0xff]   ;;  %v4811_v58 = vld [vmem:[%s6376_s12 + $0x4a8] ss:$28 sps:$4 sm:$0xff]  }
 0x4bb   :  { %3399 = vmatprep.subr.bf16.mxu0 %v4735_v59  ;;  %v4816_v59 = vld [vmem:[%s6376_s12 + $0x2ec] ss:$28 sps:$4 sm:$0xff]  }
 0x4bd   :  { %3439 = vmatpush1.bf16.msra.mxu1 %v4730_v62  ;;  %v4814_v62 = vld [vmem:[%s6376_s12 + $0x2e8] ss:$28 sps:$4 sm:$0xff]  }
 0x4be   :  { %3400 = vmatpush1.bf16.msra.mxu0 %v4733_v0  ;;  %3440 = vmatprep.subr.bf16.mxu1 %v4738_v1  ;;  %v4817_v0 = vld [vmem:[%s6376_s12 + $0x470] ss:$28 sps:$4 sm:$0xff]  }
 0x4bf   :  { %3401 = vmatprep.subr.bf16.mxu0 %v4741_v2  ;;  %v4822_v1 = vld [vmem:[%s6376_s12 + $0x2b4] ss:$28 sps:$4 sm:$0xff]   ;;  %v4825_v2 = vld [vmem:[%s6376_s12 + $0x43c] ss:$28 sps:$4 sm:$0xff]  }
 0x4c1   :  { %3441 = vmatpush1.bf16.msra.mxu1 %v4736_v3  ;;  %v4820_v3 = vld [vmem:[%s6376_s12 + $0x2b0] ss:$28 sps:$4 sm:$0xff]  }
 0x4c2   :  { %3402 = vmatpush1.bf16.msra.mxu0 %v4739_v4  ;;  %3442 = vmatprep.subr.bf16.mxu1 %v4744_v5  ;;  %v4823_v4 = vld [vmem:[%s6376_s12 + $0x438] ss:$28 sps:$4 sm:$0xff]  }
 0x4c3   :  { %3403 = vmatprep.subr.bf16.mxu0 %v4747_v6  ;;  %v4828_v5 = vld [vmem:[%s6376_s12 + $0x27c] ss:$28 sps:$4 sm:$0xff]   ;;  %v4831_v6 = vld [vmem:[%s6376_s12 + $0x404] ss:$28 sps:$4 sm:$0xff]  }
 0x4c5   :  { %3443 = vmatpush1.bf16.msra.mxu1 %v4742_v7  ;;  %v4826_v7 = vld [vmem:[%s6376_s12 + $0x278] ss:$28 sps:$4 sm:$0xff]  }
 0x4c6   :  { %3404 = vmatpush1.bf16.msra.mxu0 %v4745_v8  ;;  %3444 = vmatprep.subr.bf16.mxu1 %v4750_v9  ;;  %v4829_v8 = vld [vmem:[%s6376_s12 + $0x400] ss:$28 sps:$4 sm:$0xff]  }
 0x4c7   :  { %3405 = vmatprep.subr.bf16.mxu0 %v4753_v11  ;;  %v4834_v9 = vld [vmem:[%s6376_s12 + $0x244] ss:$28 sps:$4 sm:$0xff]   ;;  %v4837_v11 = vld [vmem:[%s6376_s12 + $0x3cc] ss:$28 sps:$4 sm:$0xff]  }
 0x4c9   :  { %3445 = vmatpush1.bf16.msra.mxu1 %v4748_v12  ;;  %v4832_v12 = vld [vmem:[%s6376_s12 + $0x240] ss:$28 sps:$4 sm:$0xff]  }
 0x4ca   :  { %3406 = vmatpush2.bf16.msra.mxu0 %v4751_v13  ;;  %3471 = vmatprep.subr.bf16.mxu1 %v4756_v14  ;;  %v4835_v13 = vld [vmem:[%s6376_s12 + $0x3c8] ss:$28 sps:$4 sm:$0xff]  }
 0x4cb   :  { %3407 = vmatprep.subr.bf16.mxu0 %v4759_v15  ;;  %v4840_v14 = vld [vmem:[%s6376_s12 + $0x20c] ss:$28 sps:$4 sm:$0xff]   ;;  %v4843_v15 = vld [vmem:[%s6376_s12 + $0x394] ss:$28 sps:$4 sm:$0xff]  }
 0x4cc   :  { %3463 = vmatmul.mubr.bf16.vlgmr.msra.gmra.mxu1 %v5957_v36 }
 0x4cd   :  { %3472 = vmatpush1.bf16.msra.mxu1 %v4754_v16  ;;  %3503 = vmatprep.mubr.bf16.mxu1 %v5962_v41  ;;  %v4838_v16 = vld [vmem:[%s6376_s12 + $0x208] ss:$28 sps:$4 sm:$0xff]  }
 0x4ce   :  { %3408 = vmatpush2.bf16.msra.mxu0 %v4757_v17  ;;  %3473 = vmatprep.subr.bf16.mxu1 %v4762_v20  ;;  %v4841_v17 = vld [vmem:[%s6376_s12 + $0x390] ss:$28 sps:$4 sm:$0xff]  }
 0x4cf   :  { %3409 = vmatprep.subr.bf16.mxu0 %v4765_v21  ;;  %v4846_v20 = vld [vmem:[%s6376_s12 + $0x1d4] ss:$28 sps:$4 sm:$0xff]   ;;  %v4847_v21 = vld [vmem:[%s6376_s12 + $0x360] ss:$28 sps:$4 sm:$0xff]  }
 0x4d1   :  { %3474 = vmatpush1.bf16.msra.mxu1 %v4760_v22  ;;  %v4844_v22 = vld [vmem:[%s6376_s12 + $0x1d0] ss:$28 sps:$4 sm:$0xff]  }
 0x4d2   :  { %3410 = vmatpush2.bf16.msra.mxu0 %v4763_v10  ;;  %3475 = vmatprep.subr.bf16.mxu1 %v4768_v23  ;;  %v4848_v10 = vld [vmem:[%s6376_s12 + $0x1a0] ss:$28 sps:$4 sm:$0xff]   ;;  %v4849_v23 = vld [vmem:[%s6376_s12 + $0x328] ss:$28 sps:$4 sm:$0xff]  }
 0x4d3   :  { %3411 = vmatprep.subr.bf16.mxu0 %v4771_v24  ;;  %v4850_v24 = vld [vmem:[%s6376_s12 + $0x520] ss:$28 sps:$4 sm:$0xff]  }
 0x4d5   :  { %3476 = vmatpush1.bf16.msra.mxu1 %v4766_v25  ;;  %v4851_v25 = vld [vmem:[%s6376_s12 + $0x168] ss:$28 sps:$4 sm:$0xff]  }
 0x4d6   :  { %3412 = vmatpush2.bf16.msra.mxu0 %v4769_v26  ;;  %3477 = vmatprep.subr.bf16.mxu1 %v4774_v27  ;;  %v4852_v26 = vld [vmem:[%s6376_s12 + $0x2f0] ss:$28 sps:$4 sm:$0xff]   ;;  %v4853_v27 = vld [vmem:[%s6376_s12 + $0x4e8] ss:$28 sps:$4 sm:$0xff]  }
 0x4d7   :  { %3413 = vmatprep.subr.bf16.mxu0 %v4777_v28  ;;  %v4855_v28 = vld [vmem:[%s6376_s12 + $0x2b8] ss:$28 sps:$4 sm:$0xff]  }
 0x4d9   :  { %3478 = vmatpush1.bf16.msra.mxu1 %v4772_v29  ;;  %v4856_v29 = vld [vmem:[%s6376_s12 + $0x4b0] ss:$28 sps:$4 sm:$0xff]  }
 0x4da   :  { %3414 = vmatpush2.bf16.msra.mxu0 %v4775_v30  ;;  %3479 = vmatprep.subr.bf16.mxu1 %v4780_v31  ;;  %v4857_v30 = vld [vmem:[%s6376_s12 + $0xf8] ss:$28 sps:$4 sm:$0xff]   ;;  %v4858_v31 = vld [vmem:[%s6376_s12 + $0x280] ss:$28 sps:$4 sm:$0xff]  }
 0x4db   :  { %3415 = vmatprep.subr.bf16.mxu0 %v4783_v32  ;;  %v4859_v32 = vld [vmem:[%s6376_s12 + $0x478] ss:$28 sps:$4 sm:$0xff]  }
 0x4dd   :  { %3480 = vmatpush1.bf16.msra.mxu1 %v4778_v33  ;;  %v4860_v33 = vld [vmem:[%s6376_s12 + $0xc0] ss:$28 sps:$4 sm:$0xff]  }
 0x4de   :  { %3416 = vmatpush2.bf16.msra.mxu0 %v4781_v34  ;;  %3481 = vmatprep.subr.bf16.mxu1 %v4786_v35  ;;  %v4861_v34 = vld [vmem:[%s6376_s12 + $0x248] ss:$28 sps:$4 sm:$0xff]   ;;  %v4862_v35 = vld [vmem:[%s6376_s12 + $0x440] ss:$28 sps:$4 sm:$0xff]  }
 0x4df   :  { %3417 = vmatprep.subr.bf16.mxu0 %v4789_v37  ;;  %v4863_v37 = vld [vmem:[%s6376_s12 + $0x88] ss:$28 sps:$4 sm:$0xff]  }
 0x4e1   :  { %3482 = vmatpush1.bf16.msra.mxu1 %v4784_v38  ;;  %v4864_v38 = vld [vmem:[%s6376_s12 + $0x210] ss:$28 sps:$4 sm:$0xff]  }
 0x4e2   :  { %3418 = vmatpush2.bf16.msra.mxu0 %v4787_v39  ;;  %3483 = vmatprep.subr.bf16.mxu1 %v4792_v40  ;;  %v4865_v39 = vld [vmem:[%s6376_s12 + $0x408] ss:$28 sps:$4 sm:$0xff]   ;;  %v4866_v40 = vld [vmem:[%s6376_s12 + $0x50] ss:$28 sps:$4 sm:$0xff]  }
 0x4e3   :  { %3419 = vmatprep.subr.bf16.mxu0 %v4795_v42  ;;  %v4867_v42 = vld [vmem:[%s6376_s12 + $0x1d8] ss:$28 sps:$4 sm:$0xff]  }
 0x4e5   :  { %3484 = vmatpush1.bf16.msra.mxu1 %v4790_v44  ;;  %v4868_v44 = vld [vmem:[%s6376_s12 + $0x3d0] ss:$28 sps:$4 sm:$0xff]  }
 0x4e6   :  { %3420 = vmatpush2.bf16.msra.mxu0 %v4793_v46  ;;  %3485 = vmatprep.subr.bf16.mxu1 %v4798_v47  ;;  %v4869_v46 = vld [vmem:[%s6376_s12 + $0x18] ss:$28 sps:$4 sm:$0xff]  }
 0x4e7   :  { %3512 = vmatprep.subr.bf16.mxu0 %v4801_v48  ;;  %v4870_v47 = vld [vmem:[%s6376_s12 + $0x398] ss:$28 sps:$4 sm:$0xff]   ;;  %v6341_v48 = vld [vmem:[%s6377_s13] sm:$0x7f] }
 0x4e9   :  { %3422 = vmatmul.mubr.bf16.vlgmr.msra.gmra.mxu0 %v5968_v43  ;;  %3486 = vmatpush1.bf16.msra.mxu1 %v4796_v49 }
 0x4ea   :  { %3513 = vmatpush1.bf16.msra.mxu0 %v4799_v50  ;;  %3487 = vmatprep.subr.bf16.mxu1 %v4804_v51  ;;  %v2411_v50 = vrot.slane %v6341_v48, %v5604_v61 }
 0x4eb   :  { %3514 = vmatprep.subr.bf16.mxu0 %v4807_v53  ;;  %3544 = vmatprep.mubr.bf16.mxu0 %v4946_v19  ;;  %v4819_v19 = vld [vmem:[%s6376_s12 + $0x474] ss:$28 sps:$4 sm:$0xff]   ;;  %v2415_v53 = vrot.slane %v6341_v48, %v5610_v63 }
 0x4ed   :  { %3488 = vmatpush2.bf16.msra.mxu1 %v4802_v54 }
 0x4ee   :  { %3515 = vmatpush1.bf16.msra.mxu0 %v4805_v52  ;;  %3489 = vmatprep.subr.bf16.mxu1 %v4810_v55 }
 0x4ef   :  { %3516 = vmatprep.subr.bf16.mxu0 %v4813_v56 }
 0x4f1   :  { %3490 = vmatpush2.bf16.msra.mxu1 %v4808_v57 }
 0x4f2   :  { %3517 = vmatpush1.bf16.msra.mxu0 %v4811_v58  ;;  %3491 = vmatprep.subr.bf16.mxu1 %v4816_v59 }
 0x4f3   :  { %3518 = vmatprep.subr.bf16.mxu0 %v4819_v19 }
 0x4f5   :  { %3492 = vmatpush2.bf16.msra.mxu1 %v4814_v62 }
 0x4f6   :  { %3519 = vmatpush1.bf16.msra.mxu0 %v4817_v0  ;;  %3493 = vmatprep.subr.bf16.mxu1 %v4822_v1 }
 0x4f7   :  { %3520 = vmatprep.subr.bf16.mxu0 %v4825_v2 }
 0x4f9   :  { %3494 = vmatpush2.bf16.msra.mxu1 %v4820_v3 }
 0x4fa   :  { %3521 = vmatpush1.bf16.msra.mxu0 %v4823_v4  ;;  %3495 = vmatprep.subr.bf16.mxu1 %v4828_v5 }
 0x4fb   :  { %3522 = vmatprep.subr.bf16.mxu0 %v4831_v6 }
 0x4fd   :  { %3496 = vmatpush2.bf16.msra.mxu1 %v4826_v7 }
 0x4fe   :  { %3523 = vmatpush1.bf16.msra.mxu0 %v4829_v8  ;;  %3497 = vmatprep.subr.bf16.mxu1 %v4834_v9 }
 0x4ff   :  { %3524 = vmatprep.subr.bf16.mxu0 %v4837_v11 }
 0x501   :  { %3498 = vmatpush2.bf16.msra.mxu1 %v4832_v12 }
 0x502   :  { %3525 = vmatpush1.bf16.msra.mxu0 %v4835_v13  ;;  %3499 = vmatprep.subr.bf16.mxu1 %v4840_v14 }
 0x503   :  { %3526 = vmatprep.subr.bf16.mxu0 %v4843_v15 }
 0x505   :  { %3500 = vmatpush2.bf16.msra.mxu1 %v4838_v16 }
 0x506   :  { %3527 = vmatpush1.bf16.msra.mxu0 %v4841_v17  ;;  %3501 = vmatprep.subr.bf16.mxu1 %v4846_v20 }
 0x507   :  { %4225 = vmatprep.subr.bf16.mxu0 %v4847_v21 }
 0x509   :  { %3502 = vmatpush2.bf16.msra.mxu1 %v4844_v22  ;;  %3545 = vmatmul.mubr.bf16.vlgmr.msra.gmra.mxu0 %v5957_v36 }
 0x50a   :  { %4226 = vmatpush3.bf16.msra.mxu0 %v4848_v10  ;;  %3585 = vmatprep.mubr.bf16.mxu0 %v5962_v41  ;;  %v4854_v41 = vld [vmem:[%s6376_s12 + $0x130] ss:$28 sps:$4 sm:$0xff]   ;;  %s4948_s12 = smov [#allocation4]  }
 0x50b   :  { %4322 = vmatprep.subr.bf16.mxu1 %v4945_v18  ;;  %4227 = vmatprep.subr.bf16.mxu0 %v4849_v23  ;;  %s3698_s13 = sshll.u32 %s4948_s12, 4  ;;  %s3699_s13 = int_to_ptr.vmem [resolvable:$true] %s3698_s13 }
 0x50c   :  { %3504 = vmatmul.mubr.bf16.vlgmr.msra.gmra.mxu1 %v5968_v43  ;;  %s4901_s16 = scalar_lea.vmem %s3699_s13, 384  ;;  %p4906_p1 = scmp.lt.s32.totalorder %s3699_s13, %s3699_s13 }
 0x50d   :  { %4323 = vmatpush3.bf16.msra.mxu1 %v4850_v24  ;;  %4338 = vmatprep.mubr.msk.bf16.mxu1 %vm4947_vm0, %v4945_v18  ;;  %p4902_p0 = scmp.ne.s32.totalorder %s3699_s13, %s4901_s16  ;;  %p4907_p2 = scmp.lt.s32.totalorder %s4901_s16, %s4901_s16 }
 0x50e   :  { %4228 = vmatpush3.bf16.msra.mxu0 %v4851_v25  ;;  %4324 = vmatprep.subr.bf16.mxu1 %v4945_v18 }
 0x50f   :  { %4229 = vmatprep.subr.bf16.mxu0 %v4852_v26  ;;  %p4908_p3 = por %p4907_p2, %p4906_p1 }
 0x511   :  { %4325 = vmatpush3.bf16.msra.mxu1 %v4853_v27  ;;  %p4909_p4 = pnand %p4908_p3, %p4902_p0 }
 0x512   :  { %4230 = vmatpush3.bf16.msra.mxu0 %v4854_v41  ;;  %4326 = vmatprep.subr.bf16.mxu1 %v4945_v18 }
 0x513   :  { %4231 = vmatprep.subr.bf16.mxu0 %v4855_v28 }
 0x515   :  { %4327 = vmatpush3.bf16.msra.mxu1 %v4856_v29 }
 0x516   :  { %4232 = vmatpush3.bf16.msra.mxu0 %v4857_v30  ;;  %4328 = vmatprep.subr.bf16.mxu1 %v4945_v18 }
 0x517   :  { %4233 = vmatprep.subr.bf16.mxu0 %v4858_v31 }
 0x519   :  { %4329 = vmatpush3.bf16.msra.mxu1 %v4859_v32 }
 0x51a   :  { %4234 = vmatpush3.bf16.msra.mxu0 %v4860_v33  ;;  %4330 = vmatprep.subr.bf16.mxu1 %v4945_v18 }
 0x51b   :  { %4235 = vmatprep.subr.bf16.mxu0 %v4861_v34 }
 0x51d   :  { %4331 = vmatpush3.bf16.msra.mxu1 %v4862_v35 }
 0x51e   :  { %4236 = vmatpush3.bf16.msra.mxu0 %v4863_v37  ;;  %4332 = vmatprep.subr.bf16.mxu1 %v4945_v18 }
 0x51f   :  { %4237 = vmatprep.subr.bf16.mxu0 %v4864_v38 }
 0x521   :  { %4333 = vmatpush3.bf16.msra.mxu1 %v4865_v39 }
 0x522   :  { %4238 = vmatpush3.bf16.msra.mxu0 %v4866_v40  ;;  %4334 = vmatprep.subr.bf16.mxu1 %v4945_v18 }
 0x523   :  { %4239 = vmatprep.subr.bf16.mxu0 %v4867_v42 }
 0x525   :  { %4335 = vmatpush3.bf16.msra.mxu1 %v4868_v44 }
 0x526   :  { %4240 = vmatpush3.bf16.msra.mxu0 %v4869_v46  ;;  %4336 = vmatprep.subr.bf16.mxu1 %v4945_v18 }
 0x529   :  { %3586 = vmatmul.mubr.bf16.vlgmr.msra.gmra.mxu0 %v5968_v43  ;;  %4337 = vmatpush3.bf16.msra.mxu1 %v4870_v47 }
 0x52c   :  { %4339 = vmatmul.mubr.bf16.vlgmr.msra.gmra.mxu1 %v5957_v36 }
 0x569   :  { %v3382_v49 = vpop.f32.mrf.mxu0 }
 0x56b   :  { %v3384_v51 = vpop.f32.mrf.mxu0 }
 0x56c   :  { %v3341_v54 = vpop.f32.mrf.mxu1 }
 0x56d   :  { %v3342_v18 = vadd.f32 %v3341_v54, %v2411_v50  ;;  %v3386_v52 = vpop.f32.mrf.mxu0 }
 0x56e   :  { %v3343_v43 = vpop.f32.mrf.mxu1 }
 0x56f   :  { %v3383_v55 = vadd.f32 %v3382_v49, %v3342_v18  ;;  %v3344_v56 = vadd.f32 %v3343_v43, %v2415_v53  ;;  %v3387_v36 = vpop.f32.mrf.mxu0 }
 0x570   :  { %v3345_v57 = vpop.f32.mrf.mxu1 }
 0x571   :  { %v4101_v58 = vmul.f32 -1.442695, %v3383_v55  ;;  %v3385_v59 = vadd.f32 %v3384_v51, %v3344_v56 }
 0x572   :  { %v3346_v19 = vpop.f32.mrf.mxu1 }
 0x573   :  { %4873 = vpow2.f32 %v4101_v58  ;;  %v4102_v62 = vmul.f32 -1.442695, %v3385_v59 }
 0x575   :  { %4875 = vpow2.f32 %v4102_v62 }
 0x580   :  { %v4874_v0 = vpop.eup %4873 }
 0x581   :  { %v3654_v61 = vadd.f32 1.0, %v4874_v0 }
 0x582   :  { %v4876_v1 = vpop.eup %4875 }
 0x583   :  { %4877 = vrcp.f32 %v3654_v61  ;;  %v3655_v2 = vadd.f32 1.0, %v4876_v1 }
 0x585   :  { %4879 = vrcp.f32 %v3655_v2 }
 0x58c   :  { %v3464_v63 = vpop.f32.mrf.mxu1 }
 0x58e   :  { %v3466_v3 = vpop.f32.mrf.mxu1 }
 0x590   :  { %v4878_v4 = vpop.eup %4877  ;;  %v3468_v5 = vpop.f32.mrf.mxu1 }
 0x591   :  { %3675 = vst [vmem:[#allocation2] sm:$0xff] %v4878_v4 }
 0x592   :  { %v4880_v6 = vpop.eup %4879  ;;  %v3469_v7 = vpop.f32.mrf.mxu1 }
 0x593   :  { %3676 = vst [vmem:[#allocation2 + $0x8] sm:$0xff] %v4880_v6 }
 0x594   :  { %4912 = shalt.err (!%p4909_p4)
}
 0x595   :  { %3701 = dma.vmem_to_hbm [thread:$0]  %s3699_s13, 384, %s6379_s15, [#allocation5]   ;;  %v2422_v8 = vsub.s32 3, %v5601_v60  ;;  %v2419_v9 = vrot.slane %v6341_v48, %v5616_v45  ;;  %v2426_v45 = vsub.s32 4, %v5601_v60  ;;  %v2430_v27 = vsub.s32 5, %v5601_v60 }
 0x596   :  { %v2434_v18 = vsub.s32 6, %v5601_v60  ;;  %s4949_s15 = smov [#allocation2]  }
 0x597   :  { %v2423_v11 = vrot.slane %v6341_v48, %v2422_v8  ;;  %v2427_v28 = vrot.slane %v6341_v48, %v2426_v45  ;;  %v2431_v30 = vrot.slane %v6341_v48, %v2430_v27  ;;  %s3688_s19 = sshll.u32 %s4949_s15, 4  ;;  %s3689_s19 = int_to_ptr.vmem [resolvable:$true] %s3688_s19 }
 0x598   :  { %v2435_v43 = vrot.slane %v6341_v48, %v2434_v18  ;;  %s4921_s20 = scalar_lea.vmem %s3689_s19, 896  ;;  %p4926_p6 = scmp.lt.s32.totalorder %s3689_s19, %s3689_s19 }
 0x599   :  { %p4922_p5 = scmp.ne.s32.totalorder %s3689_s19, %s4921_s20  ;;  %p4927_p7 = scmp.lt.s32.totalorder %s4921_s20, %s4921_s20 }
 0x59b   :  { %p4928_p8 = por %p4927_p7, %p4926_p6 }
 0x59d   :  { %p4929_p9 = pnand %p4928_p8, %p4922_p5 }
 0x5a9   :  { %v3423_v12 = vpop.f32.mrf.mxu0 }
 0x5aa   :  { %v3424_v13 = vadd.f32 %v3423_v12, %v2419_v9 }
 0x5ab   :  { %v3425_v14 = vpop.f32.mrf.mxu0 }
 0x5ac   :  { %v3465_v15 = vadd.f32 %v3464_v63, %v3424_v13  ;;  %v3426_v16 = vadd.f32 %v3425_v14, %v2423_v11 }
 0x5ad   :  { %v3427_v17 = vpop.f32.mrf.mxu0 }
 0x5ae   :  { %v4103_v20 = vmul.f32 -1.442695, %v3465_v15  ;;  %v3467_v21 = vadd.f32 %v3466_v3, %v3426_v16 }
 0x5af   :  { %v3428_v22 = vpop.f32.mrf.mxu0 }
 0x5b0   :  { %4881 = vpow2.f32 %v4103_v20  ;;  %v4104_v10 = vmul.f32 -1.442695, %v3467_v21 }
 0x5b2   :  { %4883 = vpow2.f32 %v4104_v10 }
 0x5bd   :  { %v4882_v23 = vpop.eup %4881 }
 0x5be   :  { %v3656_v24 = vadd.f32 1.0, %v4882_v23 }
 0x5bf   :  { %v4884_v25 = vpop.eup %4883 }
 0x5c0   :  { %4885 = vrcp.f32 %v3656_v24  ;;  %v3657_v26 = vadd.f32 1.0, %v4884_v25 }
 0x5c2   :  { %4887 = vrcp.f32 %v3657_v26 }
 0x5c9   :  { %v3546_v41 = vpop.f32.mrf.mxu0 }
 0x5cb   :  { %v3548_v29 = vpop.f32.mrf.mxu0 }
 0x5cc   :  { %v3505_v31 = vpop.f32.mrf.mxu1 }
 0x5cd   :  { %v4886_v32 = vpop.eup %4885  ;;  %v3506_v33 = vadd.f32 %v3505_v31, %v2427_v28  ;;  %v3550_v34 = vpop.f32.mrf.mxu0 }
 0x5ce   :  { %3677 = vst [vmem:[#allocation2 + $0x10] sm:$0xff] %v4886_v32  ;;  %v3507_v35 = vpop.f32.mrf.mxu1 }
 0x5cf   :  { %v4888_v37 = vpop.eup %4887  ;;  %v3547_v38 = vadd.f32 %v3546_v41, %v3506_v33  ;;  %v3508_v39 = vadd.f32 %v3507_v35, %v2431_v30  ;;  %v3551_v40 = vpop.f32.mrf.mxu0 }
 0x5d0   :  { %3678 = vst [vmem:[#allocation2 + $0x18] sm:$0xff] %v4888_v37  ;;  %v3509_v42 = vpop.f32.mrf.mxu1 }
 0x5d1   :  { %v4105_v44 = vmul.f32 -1.442695, %v3547_v38  ;;  %v3549_v46 = vadd.f32 %v3548_v29, %v3508_v39 }
 0x5d2   :  { %v3510_v47 = vpop.f32.mrf.mxu1 }
 0x5d3   :  { %4889 = vpow2.f32 %v4105_v44  ;;  %v4106_v49 = vmul.f32 -1.442695, %v3549_v46 }
 0x5d5   :  { %4891 = vpow2.f32 %v4106_v49 }
 0x5e0   :  { %v4890_v50 = vpop.eup %4889 }
 0x5e1   :  { %v3658_v51 = vadd.f32 1.0, %v4890_v50 }
 0x5e2   :  { %v4892_v53 = vpop.eup %4891 }
 0x5e3   :  { %4893 = vrcp.f32 %v3658_v51  ;;  %v3659_v54 = vadd.f32 1.0, %v4892_v53 }
 0x5e5   :  { %4895 = vrcp.f32 %v3659_v54 }
 0x5e9   :  { %v4241_v52 = vpop.f32.mrf.mxu0 }
 0x5eb   :  { %v4242_v55 = vpop.f32.mrf.mxu0 }
 0x5ec   :  { %v4243_v56 = vadd.f32 %v4242_v55, %v4241_v52  ;;  %v3627_v36 = vpop.f32.mrf.mxu1 }
 0x5ed   :  { %v4244_v57 = vpop.f32.mrf.mxu0 }
 0x5ee   :  { %v3588_v58 = vadd.f32 %v4243_v56, %v2435_v43  ;;  %v4340_v59 = vpop.f32.mrf.mxu1 }
 0x5ef   :  { %v4245_v19 = vpop.f32.mrf.mxu0 }
 0x5f0   :  { %v4894_v62 = vpop.eup %4893  ;;  %v3628_v0 = vadd.f32 %v3627_v36, %v3588_v58  ;;  %v3630_v61 = vpop.f32.mrf.mxu1 }
 0x5f1   :  { %3679 = vst [vmem:[#allocation2 + $0x20] sm:$0xff] %v4894_v62 }
 0x5f2   :  { %v4896_v1 = vpop.eup %4895  ;;  %v4107_v2 = vmul.f32 -1.442695, %v3628_v0  ;;  %v4341_v63 = vpop.f32.mrf.mxu1 }
 0x5f3   :  { %3680 = vst [vmem:[#allocation2 + $0x28] sm:$0xff] %v4896_v1 }
 0x5f4   :  { %4897 = vpow2.f32 %v4107_v2 }
 0x601   :  { %v4898_v60 = vpop.eup %4897 }
 0x602   :  { %v3660_v3 = vadd.f32 1.0, %v4898_v60 }
 0x604   :  { %4899 = vrcp.f32 %v3660_v3 }
 0x611   :  { %v4900_v48 = vpop.eup %4899 }
 0x612   :  { %3681 = vst.msk [vmem:[#allocation2 + $0x30] sm:$0xff] %vm1063_vm1, %v4900_v48 }
 0x613   :  { %4932 = shalt.err (!%p4929_p9)
}
 0x614   :  { %3691 = dma.vmem_to_hbm [thread:$0]  %s3689_s19, 896, %s6378_s14, [#allocation3]  }
 0x615   :  { %4941 = dma.done.wait [#allocation3], 896  }
 0x616   :  { %4942 = vsyncadd [#allocation3], 4294966400 }
 0x617   :  { %4943 = dma.done.wait [#allocation5], 384  }
 0x618   :  { %4944 = vsyncadd [#allocation5], 4294966912 }
 0x619   :  { %3708 = vsyncpa [#allocation3], 1 }
 0x61a   :  { %3709 = vsyncpa [#allocation5], 1 }

</bundles_post_ra>
